<compile_context>
chip_gen: v7x
topology: tpu7x:2x2x1
jax: 0.10.0
libtpu: 0.0.40
codegen_flags: <defaults>
</compile_context>

<pallas_src>
import jax
import jax.numpy as jnp
from jax.experimental import pallas as pl
from jax.experimental.pallas import tpu as pltpu


def _cross_gating_kernel(x_ref, y_ref,
                         w1_ref, b1_ref,      # Conv_1
                         wpx_ref, bpx_ref,    # in_project_x ∘ Conv_0 (fused)
                         wo_ref, bo_ref,      # out_project_y
                         out_ref):
    # x_ref / y_ref: (1, C, tile_s) f32 HBM tiles; cast to bf16 on the VPU
    # (hidden under the DMA) so the MXU sees bf16 operands, f32 accumulation.
    x = x_ref[0].astype(jnp.bfloat16)          # (C, tile_s)
    y = y_ref[0].astype(jnp.bfloat16)          # (C, tile_s)

    # Conv_1: per-voxel Linear over channels == W @ Y + b
    y1 = jnp.dot(w1_ref[...], y, preferred_element_type=jnp.float32) + b1_ref[...]

    # in_project_x(Conv_0(x)) with the two weights pre-fused -> GELU(tanh) gate
    gx = jnp.dot(wpx_ref[...], x, preferred_element_type=jnp.float32) + bpx_ref[...]
    gx = jax.nn.gelu(gx, approximate=True)     # matches nn.GELU(approximate='tanh')

    # gate, out_project_y, residual (dropout is identity in eval / rate=0)
    gated = (y1 * gx).astype(jnp.bfloat16)
    out = jnp.dot(wo_ref[...], gated, preferred_element_type=jnp.float32) + bo_ref[...]
    out_ref[0] = (out + y1).astype(out_ref.dtype)


def _pick_tile_s(S, requested, n_batch):
    """Spatial (lane) tile: a multiple of 128 (ragged last block is masked by
    Pallas) or the full extent S.  Keeps >=4 total grid programs when possible
    so v7x's two TensorCores each get a couple of steps to pipeline."""
    requested = max(128, (requested // 128) * 128)
    if requested >= S:
        return S                      # one whole-extent block, no ragged edge
    t = requested
    while n_batch * pl.cdiv(S, t) < 4 and t > 128:
        t = max(128, ((t // 2) // 128) * 128)
    return t


def cross_gating_block_forward(x, y, params, *, tile_s=2048, out_dtype=None):
    """x, y: [N, C, D, H, W] float32 (NCDHW, like the PyTorch module).
    Returns the gated y branch, [N, C, D, H, W] (out_dtype, default = x.dtype)."""
    assert x.shape == y.shape
    N, C, D, H, W = x.shape
    S = D * H * W
    out_dtype = x.dtype if out_dtype is None else out_dtype

    ts = _pick_tile_s(S, tile_s, N)
    grid = (N, pl.cdiv(S, ts))

    # NCDHW -> [N, C, S] is a free reshape (no transpose, no copy).  No spatial
    # padding: if ts does not divide S the last block reads past the array end
    # (unspecified lanes); every kernel op is lane-local and the edge store is
    # masked, so those lanes never reach the output.
    xf = x.reshape(N, C, S)
    yf = y.reshape(N, C, S)

    # Fuse Conv_0 followed by in_project_x on the x branch (one matmul fewer):
    #   in_project_x(Conv_0(x)) = (wp @ w0) @ x + (wp @ b0 + bp)
    hi = jax.lax.Precision.HIGHEST
    w0 = params["w0"].astype(jnp.float32)
    b0 = params["b0"].astype(jnp.float32)
    wp = params["wp"].astype(jnp.float32)
    bp = params["bp"].astype(jnp.float32)
    wpx = jnp.dot(wp, w0, precision=hi).astype(jnp.bfloat16)
    bpx = (jnp.dot(wp, b0, precision=hi) + bp).reshape(C, 1).astype(jnp.float32)

    w1 = params["w1"].astype(jnp.bfloat16)
    wo = params["wo"].astype(jnp.bfloat16)
    b1 = params["b1"].reshape(C, 1).astype(jnp.float32)
    bo = params["bo"].reshape(C, 1).astype(jnp.float32)

    data_spec = pl.BlockSpec((1, C, ts), lambda n, s: (n, 0, s))
    w_spec = pl.BlockSpec((C, C), lambda n, s: (0, 0))
    b_spec = pl.BlockSpec((C, 1), lambda n, s: (0, 0))

    out_bytes = jnp.dtype(out_dtype).itemsize
    cost = pl.CostEstimate(
        flops=2 * 3 * C * C * N * S + 6 * N * C * S,        # 3 matmuls + gating
        transcendentals=N * C * S,                           # tanh in GELU
        bytes_accessed=N * C * S * (4 + 4 + out_bytes) + 3 * C * C * 2 + 4 * C * 4,
    )

    out = pl.pallas_call(
        _cross_gating_kernel,
        out_shape=jax.ShapeDtypeStruct((N, C, S), out_dtype),
        grid_spec=pltpu.PrefetchScalarGridSpec(
            num_scalar_prefetch=0,
            grid=grid,
            in_specs=[data_spec, data_spec,
                      w_spec, b_spec,
                      w_spec, b_spec,
                      w_spec, b_spec],
            out_specs=data_spec,
        ),
        compiler_params=pltpu.CompilerParams(
            dimension_semantics=("parallel", "parallel")),
        cost_estimate=cost,
    )(xf, yf, w1, b1, wpx, bpx, wo, bo)

    return out.reshape(N, C, D, H, W)


def init_params(key, c):
    """PyTorch nn.Linear convention: weight [out, in], bias [out]."""
    ks = jax.random.split(key, 8)
    s = 1.0 / jnp.sqrt(c)
    u = lambda k, shape: jax.random.uniform(k, shape, jnp.float32, -s, s)
    return {
        "w0": u(ks[0], (c, c)), "b0": u(ks[1], (c,)),     # Conv_0
        "w1": u(ks[2], (c, c)), "b1": u(ks[3], (c,)),     # Conv_1
        "wp": u(ks[4], (c, c)), "bp": u(ks[5], (c,)),     # in_project_x
        "wo": u(ks[6], (c, c)), "bo": u(ks[7], (c,)),     # out_project_y
    }


if __name__ == "__main__":
    key = jax.random.PRNGKey(0)
    kx, ky, kp = jax.random.split(key, 3)

    # Small NCDHW clips; the module's forward only type-checks when
    # x_features == num_channels, so a single C is used for both.
    N, C, D, H, W = 2, 128, 3, 8, 8
    x = jax.random.normal(kx, (N, C, D, H, W), jnp.float32)
    y = jax.random.normal(ky, (N, C, D, H, W), jnp.float32)
    params = init_params(kp, C)

    out = cross_gating_block_forward(x, y, params)
    out = jax.block_until_ready(out)

    # Pure-JAX f32 reference of CrossGatingBlock.forward (channels-last, like
    # PyTorch).  The kernel uses bf16 MXU operands + a fused x-branch weight,
    # so differences are at bf16-epsilon scale for these O(1) activations.
    def ref_fn(x, y, p):
        hi = jax.lax.Precision.HIGHEST
        xc = jnp.transpose(x, (0, 2, 3, 4, 1))            # N,D,H,W,C
        yc = jnp.transpose(y, (0, 2, 3, 4, 1))
        mm = lambda a, w: jnp.einsum("...i,oi->...o", a, w, precision=hi)
        x1 = mm(xc, p["w0"]) + p["b0"]
        y1 = mm(yc, p["w1"]) + p["b1"]
        gx = jax.nn.gelu(mm(x1, p["wp"]) + p["bp"], approximate=True)
        o = mm(y1 * gx, p["wo"]) + p["bo"] + y1
        return jnp.transpose(o, (0, 4, 1, 2, 3))          # back to NCDHW

    ref = ref_fn(x, y, params)
    assert out.shape == (N, C, D, H, W)
    max_err = float(jnp.max(jnp.abs(out - ref)))
    assert jnp.allclose(out, ref, atol=3e-2, rtol=3e-2), max_err

    print("KERNEL_OK")
</pallas_src>

<mosaic_0001>
module attributes {stable_mosaic.version = 11 : i64} {
  func.func @_cross_gating_kernel(%arg0: i32, %arg1: i32, %arg2: memref<1x128x192xf32, #tpu.memory_space<vmem>>, %arg3: memref<1x128x192xf32, #tpu.memory_space<vmem>>, %arg4: memref<128x128xbf16, #tpu.memory_space<vmem>>, %arg5: memref<128x1xf32, #tpu.memory_space<vmem>>, %arg6: memref<128x128xbf16, #tpu.memory_space<vmem>>, %arg7: memref<128x1xf32, #tpu.memory_space<vmem>>, %arg8: memref<128x128xbf16, #tpu.memory_space<vmem>>, %arg9: memref<128x1xf32, #tpu.memory_space<vmem>>, %arg10: memref<1x128x192xf32, #tpu.memory_space<vmem>>) attributes {dimension_semantics = [#tpu.dimension_semantics<parallel>, #tpu.dimension_semantics<parallel>], iteration_bounds = array<i64: 2, 1>, scalar_prefetch = 0 : i64, scratch_operands = 0 : i64, tpu.core_type = #tpu.core_type<tc>, window_params = [{transform_indices = @transform_0, window_bounds = array<i64: 1, 128, 192>}, {transform_indices = @transform_1, window_bounds = array<i64: 1, 128, 192>}, {pipeline_mode = #tpu.pipeline_mode<synchronous>, transform_indices = @transform_2, window_bounds = array<i64: 128, 128>}, {pipeline_mode = #tpu.pipeline_mode<synchronous>, transform_indices = @transform_3, window_bounds = array<i64: 128, 1>}, {pipeline_mode = #tpu.pipeline_mode<synchronous>, transform_indices = @transform_4, window_bounds = array<i64: 128, 128>}, {pipeline_mode = #tpu.pipeline_mode<synchronous>, transform_indices = @transform_5, window_bounds = array<i64: 128, 1>}, {pipeline_mode = #tpu.pipeline_mode<synchronous>, transform_indices = @transform_6, window_bounds = array<i64: 128, 128>}, {pipeline_mode = #tpu.pipeline_mode<synchronous>, transform_indices = @transform_7, window_bounds = array<i64: 128, 1>}, {transform_indices = @transform_8, window_bounds = array<i64: 1, 128, 192>}]} {
    %c0 = arith.constant 0 : index
    %c0_0 = arith.constant 0 : index
    %c0_1 = arith.constant 0 : index
    %0 = vector.load %arg2[%c0, %c0_0, %c0_1] : memref<1x128x192xf32, #tpu.memory_space<vmem>>, vector<1x128x192xf32>
    %1 = vector.shape_cast %0 : vector<1x128x192xf32> to vector<128x192xf32>
    %2 = arith.truncf %1 : vector<128x192xf32> to vector<128x192xbf16>
    %c0_2 = arith.constant 0 : index
    %c0_3 = arith.constant 0 : index
    %c0_4 = arith.constant 0 : index
    %3 = vector.load %arg3[%c0_2, %c0_3, %c0_4] : memref<1x128x192xf32, #tpu.memory_space<vmem>>, vector<1x128x192xf32>
    %4 = vector.shape_cast %3 : vector<1x128x192xf32> to vector<128x192xf32>
    %5 = arith.truncf %4 : vector<128x192xf32> to vector<128x192xbf16>
    %c0_5 = arith.constant 0 : index
    %c0_6 = arith.constant 0 : index
    %6 = vector.load %arg4[%c0_5, %c0_6] : memref<128x128xbf16, #tpu.memory_space<vmem>>, vector<128x128xbf16>
    %cst = arith.constant dense<0.000000e+00> : vector<128x192xf32>
    %7 = tpu.matmul %6, %5, %cst {dimension_numbers = #tpu.dot_dimension_numbers<[1], [0], [0], [1], [0, 0, 1, 1], [], []>} : vector<128x128xbf16>, vector<128x192xbf16>, vector<128x192xf32> -> vector<128x192xf32>
    %c0_7 = arith.constant 0 : index
    %c0_8 = arith.constant 0 : index
    %8 = vector.load %arg5[%c0_7, %c0_8] : memref<128x1xf32, #tpu.memory_space<vmem>>, vector<128x1xf32>
    %9 = vector.broadcast %8 : vector<128x1xf32> to vector<128x192xf32>
    %10 = arith.addf %7, %9 : vector<128x192xf32>
    %c0_9 = arith.constant 0 : index
    %c0_10 = arith.constant 0 : index
    %11 = vector.load %arg6[%c0_9, %c0_10] : memref<128x128xbf16, #tpu.memory_space<vmem>>, vector<128x128xbf16>
    %cst_11 = arith.constant dense<0.000000e+00> : vector<128x192xf32>
    %12 = tpu.matmul %11, %2, %cst_11 {dimension_numbers = #tpu.dot_dimension_numbers<[1], [0], [0], [1], [0, 0, 1, 1], [], []>} : vector<128x128xbf16>, vector<128x192xbf16>, vector<128x192xf32> -> vector<128x192xf32>
    %c0_12 = arith.constant 0 : index
    %c0_13 = arith.constant 0 : index
    %13 = vector.load %arg7[%c0_12, %c0_13] : memref<128x1xf32, #tpu.memory_space<vmem>>, vector<128x1xf32>
    %14 = vector.broadcast %13 : vector<128x1xf32> to vector<128x192xf32>
    %15 = arith.addf %12, %14 : vector<128x192xf32>
    %16 = arith.mulf %15, %15 : vector<128x192xf32>
    %17 = arith.mulf %15, %16 : vector<128x192xf32>
    %cst_14 = arith.constant 4.471500e-02 : f32
    %18 = vector.broadcast %cst_14 : f32 to vector<128x192xf32>
    %19 = arith.mulf %18, %17 : vector<128x192xf32>
    %20 = arith.addf %15, %19 : vector<128x192xf32>
    %cst_15 = arith.constant 0.797884583 : f32
    %21 = vector.broadcast %cst_15 : f32 to vector<128x192xf32>
    %22 = arith.mulf %21, %20 : vector<128x192xf32>
    %23 = math.tanh %22 : vector<128x192xf32>
    %cst_16 = arith.constant 1.000000e+00 : f32
    %24 = vector.broadcast %cst_16 : f32 to vector<128x192xf32>
    %25 = arith.addf %24, %23 : vector<128x192xf32>
    %cst_17 = arith.constant 5.000000e-01 : f32
    %26 = vector.broadcast %cst_17 : f32 to vector<128x192xf32>
    %27 = arith.mulf %26, %25 : vector<128x192xf32>
    %28 = arith.mulf %15, %27 : vector<128x192xf32>
    %29 = arith.mulf %10, %28 : vector<128x192xf32>
    %30 = arith.truncf %29 : vector<128x192xf32> to vector<128x192xbf16>
    %c0_18 = arith.constant 0 : index
    %c0_19 = arith.constant 0 : index
    %31 = vector.load %arg8[%c0_18, %c0_19] : memref<128x128xbf16, #tpu.memory_space<vmem>>, vector<128x128xbf16>
    %cst_20 = arith.constant dense<0.000000e+00> : vector<128x192xf32>
    %32 = tpu.matmul %31, %30, %cst_20 {dimension_numbers = #tpu.dot_dimension_numbers<[1], [0], [0], [1], [0, 0, 1, 1], [], []>} : vector<128x128xbf16>, vector<128x192xbf16>, vector<128x192xf32> -> vector<128x192xf32>
    %c0_21 = arith.constant 0 : index
    %c0_22 = arith.constant 0 : index
    %33 = vector.load %arg9[%c0_21, %c0_22] : memref<128x1xf32, #tpu.memory_space<vmem>>, vector<128x1xf32>
    %34 = vector.broadcast %33 : vector<128x1xf32> to vector<128x192xf32>
    %35 = arith.addf %32, %34 : vector<128x192xf32>
    %36 = arith.addf %35, %10 : vector<128x192xf32>
    %c0_23 = arith.constant 0 : index
    %c0_24 = arith.constant 0 : index
    %c0_25 = arith.constant 0 : index
    %37 = vector.load %arg10[%c0_23, %c0_24, %c0_25] : memref<1x128x192xf32, #tpu.memory_space<vmem>>, vector<1x128x192xf32>
    %38 = vector.shape_cast %37 : vector<1x128x192xf32> to vector<128x192xf32>
    %39 = vector.shape_cast %36 : vector<128x192xf32> to vector<1x128x192xf32>
    tpu.vector_store %arg10[%c0_23, %c0_24, %c0_25], %39 {strides = array<i32>} : memref<1x128x192xf32, #tpu.memory_space<vmem>>, vector<1x128x192xf32>,
    return
  }
  func.func @transform_0(%arg0: i32, %arg1: i32) -> (i32, i32, i32) {
    %c0_i32 = arith.constant 0 : i32
    %c0_i32_0 = arith.constant 0 : i32
    return %arg0, %c0_i32, %arg1 : i32, i32, i32
  }
  func.func @transform_1(%arg0: i32, %arg1: i32) -> (i32, i32, i32) {
    %c0_i32 = arith.constant 0 : i32
    %c0_i32_0 = arith.constant 0 : i32
    return %arg0, %c0_i32, %arg1 : i32, i32, i32
  }
  func.func @transform_2(%arg0: i32, %arg1: i32) -> (i32, i32) {
    %c0_i32 = arith.constant 0 : i32
    %c0_i32_0 = arith.constant 0 : i32
    %c0_i32_1 = arith.constant 0 : i32
    return %c0_i32, %c0_i32_0 : i32, i32
  }
  func.func @transform_3(%arg0: i32, %arg1: i32) -> (i32, i32) {
    %c0_i32 = arith.constant 0 : i32
    %c0_i32_0 = arith.constant 0 : i32
    %c0_i32_1 = arith.constant 0 : i32
    return %c0_i32, %c0_i32_0 : i32, i32
  }
  func.func @transform_4(%arg0: i32, %arg1: i32) -> (i32, i32) {
    %c0_i32 = arith.constant 0 : i32
    %c0_i32_0 = arith.constant 0 : i32
    %c0_i32_1 = arith.constant 0 : i32
    return %c0_i32, %c0_i32_0 : i32, i32
  }
  func.func @transform_5(%arg0: i32, %arg1: i32) -> (i32, i32) {
    %c0_i32 = arith.constant 0 : i32
    %c0_i32_0 = arith.constant 0 : i32
    %c0_i32_1 = arith.constant 0 : i32
    return %c0_i32, %c0_i32_0 : i32, i32
  }
  func.func @transform_6(%arg0: i32, %arg1: i32) -> (i32, i32) {
    %c0_i32 = arith.constant 0 : i32
    %c0_i32_0 = arith.constant 0 : i32
    %c0_i32_1 = arith.constant 0 : i32
    return %c0_i32, %c0_i32_0 : i32, i32
  }
  func.func @transform_7(%arg0: i32, %arg1: i32) -> (i32, i32) {
    %c0_i32 = arith.constant 0 : i32
    %c0_i32_0 = arith.constant 0 : i32
    %c0_i32_1 = arith.constant 0 : i32
    return %c0_i32, %c0_i32_0 : i32, i32
  }
  func.func @transform_8(%arg0: i32, %arg1: i32) -> (i32, i32, i32) {
    %c0_i32 = arith.constant 0 : i32
    %c0_i32_0 = arith.constant 0 : i32
    return %arg0, %c0_i32, %arg1 : i32, i32, i32
  }
}

</mosaic_0001>

<bundles_post_ra>
// kernel: tpu_custom_call.1
= control target key start
LH: loop header
LB: loop body
LE: loop exit
PB: predicated region body
PF: predicated region fallthrough
CT: control target
= control target key end

     0   :  { %s2044_s27 = smov 0   ;;  %s2046_s28 = smov 0   ;;  %s2999_s0 = inlined_call_operand.vmem [shape: f32[2,128,192], index: 0, kind: input, shape index: {}]   ;;  %s3000_s1 = inlined_call_operand.vmem [shape: f32[2,128,192], index: 1, kind: input, shape index: {}]   ;;  %s3001_s2 = inlined_call_operand.vmem [shape: bf16[128,128], index: 2, kind: input, shape index: {}]   ;;  %s3002_s3 = inlined_call_operand.vmem [shape: f32[128,1], index: 3, kind: input, shape index: {}]   ;;  %s3003_s4 = inlined_call_operand.vmem [shape: bf16[128,128], index: 4, kind: input, shape index: {}]   ;;  %s3004_s5 = inlined_call_operand.vmem [shape: f32[128,1], index: 5, kind: input, shape index: {}]   ;;  %s3005_s6 = inlined_call_operand.vmem [shape: bf16[128,128], index: 6, kind: input, shape index: {}]   ;;  %s3006_s7 = inlined_call_operand.vmem [shape: f32[128,1], index: 7, kind: input, shape index: {}]   ;;  %s3007_s8 = inlined_call_operand.vmem [shape: f32[2,128,192], index: 8, kind: output, shape index: {}]  }
   0x1   :  { %s2048_s29 = smov 0  }
   0x2 LB: > { %s30_s30 = sadd.s32 1, %s1992_s28  ;;  %p1807_p0 = scmp.ge.s32.totalorder %s1996_s29, 1  ;;  %s1996_s29 = sphi %s2048_s29, %s18_s29   ;;  %s1992_s28 = sphi %s2046_s28, %s3071_s28   ;;  %s1988_s27 = sphi %s2044_s27, %s3070_s27  }
   0x3   : > { %p32_p1 = scmp.ge.s32.totalorder %s30_s30, 2  ;;  %p300_p2 = scmp.lt.s32.totalorder %s1996_s29, 3 }
   0x5   : > { %s3073_s30 = smov (%p32_p1, %s30_s30), 0  ;;  %p301_p3 = pnand %p1807_p0, %p300_p2 }
   0x7   : > { %304 = sbr.rel (%p301_p3) target bundleno = 685 (0x2ad), region = 52 }
   0xe   : > { %p352_p4 = scmp.lt.s32.totalorder %s1988_s27, 1  ;;  %v3008_v0 = vmov 0   ;;  %v767_v44 = vld [vmem:[%s3004_s5] sm:$0xff]  ;;  %v769_v45 = vld [vmem:[%s3004_s5 + $0x10] sm:$0xff]  ;;  %v768_v46 = vld [vmem:[%s3004_s5 + $0x8] sm:$0xff]  ;;  %vm1666_vm0 = vcmask 523264  }
   0xf   : > { %710 = vmatprep.mubr.bf16.mxu1 %v3008_v0  ;;  %670 = vmatprep.mubr.bf16.mxu0 %v3008_v0  ;;  %v770_v48 = vld [vmem:[%s3004_s5 + $0x18] sm:$0xff]  ;;  %v771_v54 = vld [vmem:[%s3004_s5 + $0x20] sm:$0xff]  ;;  %v772_v58 = vld [vmem:[%s3004_s5 + $0x28] sm:$0xff] }
  0x10   : > { %s3075_s27 = smov (!%p352_p4, %s1988_s27), 1  ;;  %1884 = vset.pattern.permute.xlu0 %v3008_v0  ;;  %1885 = vset.pattern.permute.xlu1 %v3008_v0  ;;  %v1886_v62 = vld [vmem:[%s3001_s2 + $0x20] sm:$0xff]  }
  0x11   : > { %s2066_s9 = sshll.u32 %s3075_s27, 8  ;;  %785 = vperm.xlu0 %1884, %v767_v44   ;;  %795 = vperm.xlu1 %1885, %v769_v45   ;;  %v1890_v63 = vld [vmem:[%s3001_s2] sm:$0xff]   ;;  %v495_v44 = vld [vmem:[%s3002_s3 + $0x8] sm:$0xff]  ;;  %v781_v45 = vld [vmem:[%s3004_s5 + $0x70] sm:$0xff] }
  0x12   : > { %s2072_s12 = scalar_lea.vmem %s3000_s1, %s2066_s9  ;;  %s2114_s19 = scalar_lea.vmem %s2999_s0, %s2066_s9 }
  0x13   : > { %v431_v1 = vld [vmem:[%s2072_s12 + $0x8] sm:$0xff]  ;;  %v433_v2 = vld [vmem:[%s2072_s12 + $0x18] sm:$0xff]  ;;  %v430_v3 = vld [vmem:[%s2072_s12] sm:$0xff]  ;;  %s2908_s21 = scalar_lea.vmem %s3007_s8, %s2066_s9 }
  0x14   : > { %v463_v4 = vpack.c.bf16 %v433_v2, %v431_v1  ;;  %v432_v5 = vld [vmem:[%s2072_s12 + $0x10] sm:$0xff]  ;;  %v435_v6 = vld [vmem:[%s2072_s12 + $0x28] sm:$0xff]  ;;  %v437_v7 = vld [vmem:[%s2072_s12 + $0x38] sm:$0xff] }
  0x15   : > { %v462_v8 = vpack.c.bf16 %v432_v5, %v430_v3  ;;  %v465_v9 = vpack.c.bf16 %v437_v7, %v435_v6  ;;  %v434_v10 = vld [vmem:[%s2072_s12 + $0x20] sm:$0xff]  ;;  %v436_v11 = vld [vmem:[%s2072_s12 + $0x30] sm:$0xff]  ;;  %v439_v12 = vld [vmem:[%s2072_s12 + $0x48] sm:$0xff]  ;;  %790 = vperm.xlu0 %1884, %v768_v46   ;;  %800 = vperm.xlu1 %1885, %v770_v48  }
  0x16   : > { %1843 = vmatprep.subr.bf16.mxu1 %v463_v4  ;;  %v441_v13 = vld [vmem:[%s2072_s12 + $0x58] sm:$0xff]  ;;  %638 = vmatprep.subr.bf16.mxu0 %v463_v4  ;;  %v464_v14 = vpack.c.bf16 %v436_v11, %v434_v10  ;;  %v438_v16 = vld [vmem:[%s2072_s12 + $0x40] sm:$0xff]  ;;  %v440_v17 = vld [vmem:[%s2072_s12 + $0x50] sm:$0xff] }
  0x17   : > { %1851 = vmatpush1.bf16.msra.mxu1 %v462_v8  ;;  %639 = vmatpush1.bf16.msra.mxu0 %v462_v8  ;;  %v467_v15 = vpack.c.bf16 %v441_v13, %v439_v12  ;;  %v443_v18 = vld [vmem:[%s2072_s12 + $0x68] sm:$0xff]  ;;  %v445_v19 = vld [vmem:[%s2072_s12 + $0x78] sm:$0xff]  ;;  %v466_v20 = vpack.c.bf16 %v440_v17, %v438_v16  ;;  %v442_v22 = vld [vmem:[%s2072_s12 + $0x60] sm:$0xff] }
  0x18   : > { %1844 = vmatprep.subr.bf16.mxu1 %v465_v9  ;;  %640 = vmatprep.subr.bf16.mxu0 %v465_v9  ;;  %v469_v21 = vpack.c.bf16 %v445_v19, %v443_v18  ;;  %v444_v23 = vld [vmem:[%s2072_s12 + $0x70] sm:$0xff]  ;;  %v447_v24 = vld [vmem:[%s2072_s12 + $0x88] sm:$0xff]  ;;  %v449_v25 = vld [vmem:[%s2072_s12 + $0x98] sm:$0xff] }
  0x19   : > { %v468_v26 = vpack.c.bf16 %v444_v23, %v442_v22  ;;  %v471_v27 = vpack.c.bf16 %v449_v25, %v447_v24  ;;  %v446_v28 = vld [vmem:[%s2072_s12 + $0x80] sm:$0xff]  ;;  %v448_v29 = vld [vmem:[%s2072_s12 + $0x90] sm:$0xff]  ;;  %v451_v30 = vld [vmem:[%s2072_s12 + $0xa8] sm:$0xff]  ;;  %805 = vperm.xlu0 %1884, %v771_v54   ;;  %810 = vperm.xlu1 %1885, %v772_v58  }
  0x1a   : > { %v453_v31 = vld [vmem:[%s2072_s12 + $0xb8] sm:$0xff]  ;;  %v470_v32 = vpack.c.bf16 %v448_v29, %v446_v28  ;;  %v450_v34 = vld [vmem:[%s2072_s12 + $0xa0] sm:$0xff]  ;;  %v452_v35 = vld [vmem:[%s2072_s12 + $0xb0] sm:$0xff] }
  0x1b   : > { %1852 = vmatpush1.bf16.msra.mxu1 %v464_v14  ;;  %641 = vmatpush1.bf16.msra.mxu0 %v464_v14  ;;  %v473_v33 = vpack.c.bf16 %v453_v31, %v451_v30  ;;  %v455_v36 = vld [vmem:[%s2072_s12 + $0xc8] sm:$0xff]  ;;  %v457_v37 = vld [vmem:[%s2072_s12 + $0xd8] sm:$0xff]  ;;  %v472_v38 = vpack.c.bf16 %v452_v35, %v450_v34  ;;  %v454_v39 = vld [vmem:[%s2072_s12 + $0xc0] sm:$0xff] }
  0x1c   : > { %1845 = vmatprep.subr.bf16.mxu1 %v467_v15  ;;  %642 = vmatprep.subr.bf16.mxu0 %v467_v15  ;;  %v456_v40 = vld [vmem:[%s2072_s12 + $0xd0] sm:$0xff]  ;;  %v475_v41 = vpack.c.bf16 %v457_v37, %v455_v36  ;;  %v459_v42 = vld [vmem:[%s2072_s12 + $0xe8] sm:$0xff]  ;;  %v461_v43 = vld [vmem:[%s2072_s12 + $0xf8] sm:$0xff] }
  0x1d   : > { %v474_v47 = vpack.c.bf16 %v456_v40, %v454_v39  ;;  %v477_v49 = vpack.c.bf16 %v461_v43, %v459_v42  ;;  %v458_v50 = vld [vmem:[%s2072_s12 + $0xe0] sm:$0xff]  ;;  %v460_v51 = vld [vmem:[%s2072_s12 + $0xf0] sm:$0xff]  ;;  %v383_v52 = vld [vmem:[%s2114_s19 + $0x8] sm:$0xff] }
  0x1e   : > { %v385_v53 = vld [vmem:[%s2114_s19 + $0x18] sm:$0xff]  ;;  %v476_v55 = vpack.c.bf16 %v460_v51, %v458_v50  ;;  %v382_v56 = vld [vmem:[%s2114_s19] sm:$0xff]  ;;  %v384_v57 = vld [vmem:[%s2114_s19 + $0x10] sm:$0xff] }
  0x1f   : > { %1853 = vmatpush1.bf16.msra.mxu1 %v466_v20  ;;  %643 = vmatpush1.bf16.msra.mxu0 %v466_v20  ;;  %v415_v59 = vpack.c.bf16 %v385_v53, %v383_v52  ;;  %v387_v60 = vld [vmem:[%s2114_s19 + $0x28] sm:$0xff]  ;;  %v389_v61 = vld [vmem:[%s2114_s19 + $0x38] sm:$0xff]  ;;  %v773_v1 = vld [vmem:[%s3004_s5 + $0x30] sm:$0xff]  ;;  %v414_v2 = vpack.c.bf16 %v384_v57, %v382_v56 }
  0x20   : > { %1846 = vmatprep.subr.bf16.mxu1 %v469_v21  ;;  %644 = vmatprep.subr.bf16.mxu0 %v469_v21  ;;  %v417_v3 = vpack.c.bf16 %v389_v61, %v387_v60  ;;  %v386_v4 = vld [vmem:[%s2114_s19 + $0x20] sm:$0xff]  ;;  %v388_v5 = vld [vmem:[%s2114_s19 + $0x30] sm:$0xff]  ;;  %v391_v6 = vld [vmem:[%s2114_s19 + $0x48] sm:$0xff] }
  0x21   : > { %v393_v7 = vld [vmem:[%s2114_s19 + $0x58] sm:$0xff]  ;;  %815 = vperm.xlu0 %1884, %v773_v1   ;;  %v775_v9 = vld [vmem:[%s3004_s5 + $0x40] sm:$0xff]  ;;  %v416_v10 = vpack.c.bf16 %v388_v5, %v386_v4  ;;  %v392_v12 = vld [vmem:[%s2114_s19 + $0x50] sm:$0xff] }
  0x22   : > { %v774_v8 = vld [vmem:[%s3004_s5 + $0x38] sm:$0xff]  ;;  %v390_v11 = vld [vmem:[%s2114_s19 + $0x40] sm:$0xff]  ;;  %v1887_v13 = vld [vmem:[%s3001_s2 + $0x28] sm:$0xff]   ;;  %v419_v14 = vpack.c.bf16 %v393_v7, %v391_v6 }
  0x23   : > { %1854 = vmatpush1.bf16.msra.mxu1 %v468_v26  ;;  %645 = vmatpush1.bf16.msra.mxu0 %v468_v26  ;;  %v395_v15 = vld [vmem:[%s2114_s19 + $0x68] sm:$0xff]  ;;  %v397_v16 = vld [vmem:[%s2114_s19 + $0x78] sm:$0xff]  ;;  %v777_v19 = vld [vmem:[%s3004_s5 + $0x50] sm:$0xff]  ;;  %v418_v20 = vpack.c.bf16 %v392_v12, %v390_v11 }
  0x24   : > { %1847 = vmatprep.subr.bf16.mxu1 %v471_v27  ;;  %646 = vmatprep.subr.bf16.mxu0 %v471_v27  ;;  %v1892_v17 = vld [vmem:[%s3001_s2 + $0x8] sm:$0xff]   ;;  %v421_v21 = vpack.c.bf16 %v397_v16, %v395_v15  ;;  %v394_v22 = vld [vmem:[%s2114_s19 + $0x60] sm:$0xff]  ;;  %v396_v23 = vld [vmem:[%s2114_s19 + $0x70] sm:$0xff] }
  0x25   : > { %820 = vperm.xlu1 %1885, %v774_v8   ;;  %825 = vperm.xlu0 %1884, %v775_v9   ;;  %v776_v18 = vld [vmem:[%s3004_s5 + $0x48] sm:$0xff]  ;;  %v401_v25 = vld [vmem:[%s2114_s19 + $0x98] sm:$0xff]  ;;  %v779_v27 = vld [vmem:[%s3004_s5 + $0x60] sm:$0xff]  ;;  %v420_v28 = vpack.c.bf16 %v396_v23, %v394_v22 }
  0x26   : > { %v399_v24 = vld [vmem:[%s2114_s19 + $0x88] sm:$0xff]  ;;  %v778_v26 = vld [vmem:[%s3004_s5 + $0x58] sm:$0xff]  ;;  %v1888_v29 = vld [vmem:[%s3001_s2 + $0x30] sm:$0xff]  }
  0x27   : > { %1855 = vmatpush1.bf16.msra.mxu1 %v470_v32  ;;  %647 = vmatpush1.bf16.msra.mxu0 %v470_v32  ;;  %v423_v30 = vpack.c.bf16 %v401_v25, %v399_v24  ;;  %v398_v31 = vld [vmem:[%s2114_s19 + $0x80] sm:$0xff]  ;;  %v400_v32 = vld [vmem:[%s2114_s19 + $0x90] sm:$0xff]  ;;  %v405_v34 = vld [vmem:[%s2114_s19 + $0xb8] sm:$0xff] }
  0x28   : > { %1848 = vmatprep.subr.bf16.mxu1 %v473_v33  ;;  %648 = vmatprep.subr.bf16.mxu0 %v473_v33  ;;  %v403_v33 = vld [vmem:[%s2114_s19 + $0xa8] sm:$0xff]  ;;  %v1894_v35 = vld [vmem:[%s3001_s2 + $0x10] sm:$0xff]   ;;  %v402_v36 = vld [vmem:[%s2114_s19 + $0xa0] sm:$0xff]  ;;  %v422_v40 = vpack.c.bf16 %v400_v32, %v398_v31 }
  0x29   : > { %830 = vperm.xlu1 %1885, %v776_v18   ;;  %835 = vperm.xlu0 %1884, %v777_v19   ;;  %v404_v37 = vld [vmem:[%s2114_s19 + $0xb0] sm:$0xff]  ;;  %v494_v39 = vld [vmem:[%s3002_s3] sm:$0xff]  ;;  %v409_v42 = vld [vmem:[%s2114_s19 + $0xd8] sm:$0xff]  ;;  %v425_v43 = vpack.c.bf16 %v405_v34, %v403_v33 }
  0x2a   : > { %v424_v46 = vpack.c.bf16 %v404_v37, %v402_v36  ;;  %v406_v48 = vld [vmem:[%s2114_s19 + $0xc0] sm:$0xff]  ;;  %v1889_v50 = vld [vmem:[%s3001_s2 + $0x38] sm:$0xff]   ;;  %v411_v51 = vld [vmem:[%s2114_s19 + $0xe8] sm:$0xff] }
  0x2b   : > { %1856 = vmatpush1.bf16.msra.mxu1 %v472_v38  ;;  %649 = vmatpush1.bf16.msra.mxu0 %v472_v38  ;;  %v780_v38 = vld [vmem:[%s3004_s5 + $0x68] sm:$0xff]  ;;  %v413_v52 = vld [vmem:[%s2114_s19 + $0xf8] sm:$0xff]  ;;  %v410_v58 = vld [vmem:[%s2114_s19 + $0xe0] sm:$0xff] }
  0x2c   : > { %1849 = vmatprep.subr.bf16.mxu1 %v475_v41  ;;  %650 = vmatprep.subr.bf16.mxu0 %v475_v41  ;;  %v407_v41 = vld [vmem:[%s2114_s19 + $0xc8] sm:$0xff]  ;;  %v1896_v53 = vld [vmem:[%s3001_s2 + $0x18] sm:$0xff]   ;;  %v429_v57 = vpack.c.bf16 %v413_v52, %v411_v51  ;;  %v498_v61 = vld [vmem:[%s3002_s3 + $0x20] sm:$0xff] }
  0x2d   : > { %840 = vperm.xlu1 %1885, %v778_v26   ;;  %845 = vperm.xlu0 %1884, %v779_v27   ;;  %v782_v54 = vld [vmem:[%s3004_s5 + $0x78] sm:$0xff]  ;;  %v499_v1 = vld [vmem:[%s3002_s3 + $0x28] sm:$0xff]  ;;  %v502_v4 = vld [vmem:[%s3002_s3 + $0x40] sm:$0xff] }
  0x2e   : > { %v497_v60 = vld [vmem:[%s3002_s3 + $0x18] sm:$0xff]  ;;  %v1893_v5 = vld [vmem:[%s3003_s4 + $0x8] sm:$0xff]   ;;  %v504_v7 = vld [vmem:[%s3002_s3 + $0x50] sm:$0xff] }
  0x2f   : > { %1857 = vmatpush1.bf16.msra.mxu1 %v474_v47  ;;  %651 = vmatpush1.bf16.msra.mxu0 %v474_v47  ;;  %v427_v47 = vpack.c.bf16 %v409_v42, %v407_v41  ;;  %v503_v6 = vld [vmem:[%s3002_s3 + $0x48] sm:$0xff]  ;;  %v505_v8 = vld [vmem:[%s3002_s3 + $0x58] sm:$0xff]  ;;  %v506_v9 = vld [vmem:[%s3002_s3 + $0x60] sm:$0xff] }
  0x30   : > { %1850 = vmatprep.subr.bf16.mxu1 %v477_v49  ;;  %652 = vmatprep.subr.bf16.mxu0 %v477_v49  ;;  %v408_v49 = vld [vmem:[%s2114_s19 + $0xd0] sm:$0xff]  ;;  %v507_v11 = vld [vmem:[%s3002_s3 + $0x68] sm:$0xff]  ;;  %v1897_v15 = vld [vmem:[%s3003_s4 + $0x18] sm:$0xff]  }
  0x31   : > { %850 = vperm.xlu1 %1885, %v780_v38   ;;  %512 = vperm.xlu0 %1884, %v494_v39   ;;  %v426_v56 = vpack.c.bf16 %v408_v49, %v406_v48  ;;  %v508_v12 = vld [vmem:[%s3002_s3 + $0x70] sm:$0xff]  ;;  %v1377_v16 = vld [vmem:[%s3006_s7 + $0x8] sm:$0xff]  ;;  %v1379_v18 = vld [vmem:[%s3006_s7 + $0x18] sm:$0xff] }
  0x32   : > { %v1380_v19 = vld [vmem:[%s3006_s7 + $0x20] sm:$0xff]  ;;  %v1382_v22 = vld [vmem:[%s3006_s7 + $0x30] sm:$0xff]  ;;  %v1383_v23 = vld [vmem:[%s3006_s7 + $0x38] sm:$0xff] }
  0x33   : > { %1858 = vmatpush1.bf16.msra.mxu1 %v476_v55  ;;  %653 = vmatpush1.bf16.msra.mxu0 %v476_v55  ;;  %v496_v55 = vld [vmem:[%s3002_s3 + $0x10] sm:$0xff]  ;;  %v1384_v24 = vld [vmem:[%s3006_s7 + $0x40] sm:$0xff]  ;;  %v1899_v25 = vld [vmem:[%s3003_s4 + $0x28] sm:$0xff]  }
  0x34   : > { %911 = vmatprep.subr.bf16.mxu1 %v415_v59  ;;  %v412_v59 = vld [vmem:[%s2114_s19 + $0xf0] sm:$0xff]  ;;  %v1385_v26 = vld [vmem:[%s3006_s7 + $0x48] sm:$0xff]  ;;  %v1391_v33 = vld [vmem:[%s3006_s7 + $0x78] sm:$0xff] }
  0x35   : > { %517 = vperm.xlu1 %1885, %v495_v44   ;;  %855 = vperm.xlu0 %1884, %v781_v45   ;;  %v1386_v27 = vld [vmem:[%s3006_s7 + $0x50] sm:$0xff]  ;;  %v1389_v31 = vld [vmem:[%s3006_s7 + $0x68] sm:$0xff]  ;;  %v1901_v34 = vld [vmem:[%s3003_s4 + $0x38] sm:$0xff]  }
  0x36   : > { %711 = vmatmul.mubr.bf16.vlgmr.msra.gmra.mrb[0].mxu1 %v1886_v62  ;;  %671 = vmatmul.mubr.bf16.vlgmr.msra.gmra.mrb[0].mxu0 %v1890_v63  ;;  %v428_v62 = vpack.c.bf16 %v412_v59, %v410_v58  ;;  %v1891_v63 = vld [vmem:[%s3003_s4] sm:$0xff]   ;;  %v1390_v32 = vld [vmem:[%s3006_s7 + $0x70] sm:$0xff] }
  0x37   : > { %912 = vmatpush1.bf16.msra.mxu1 %v414_v2  ;;  %720 = vmatprep.mubr.bf16.mxu1 %v3008_v0  ;;  %v500_v2 = vld [vmem:[%s3002_s3 + $0x30] sm:$0xff] }
  0x38   : > { %913 = vmatprep.subr.bf16.mxu1 %v417_v3  ;;  %680 = vmatprep.mubr.bf16.mxu0 %v3008_v0  ;;  %v501_v3 = vld [vmem:[%s3002_s3 + $0x38] sm:$0xff] }
  0x39   : > { %860 = vperm.xlu1 %1885, %v782_v54   ;;  %522 = vperm.xlu0 %1884, %v496_v55  }
  0x3b   : > { %914 = vmatpush1.bf16.msra.mxu1 %v416_v10  ;;  %v1895_v10 = vld [vmem:[%s3003_s4 + $0x10] sm:$0xff]  }
  0x3c   : > { %915 = vmatprep.subr.bf16.mxu1 %v419_v14  ;;  %v1376_v14 = vld [vmem:[%s3006_s7] sm:$0xff] }
  0x3d   : > { %527 = vperm.xlu1 %1885, %v497_v60   ;;  %532 = vperm.xlu0 %1884, %v498_v61  }
  0x3e   : > { %721 = vmatmul.mubr.bf16.gmra.mrb[4].mxu1 %v1887_v13  ;;  %681 = vmatmul.mubr.bf16.gmra.mrb[4].mxu0 %v1892_v17  ;;  %v509_v13 = vld [vmem:[%s3002_s3 + $0x78] sm:$0xff]  ;;  %v1378_v17 = vld [vmem:[%s3006_s7 + $0x10] sm:$0xff] }
  0x3f   : > { %916 = vmatpush1.bf16.msra.mxu1 %v418_v20  ;;  %730 = vmatprep.mubr.bf16.mxu1 %v3008_v0  ;;  %v1898_v20 = vld [vmem:[%s3003_s4 + $0x20] sm:$0xff]  }
  0x40   : > { %917 = vmatprep.subr.bf16.mxu1 %v421_v21  ;;  %690 = vmatprep.mubr.bf16.mxu0 %v3008_v0  ;;  %v1381_v21 = vld [vmem:[%s3006_s7 + $0x28] sm:$0xff] }
  0x41   : > { %537 = vperm.xlu1 %1885, %v499_v1   ;;  %542 = vperm.xlu0 %1884, %v500_v2  }
  0x43   : > { %918 = vmatpush1.bf16.msra.mxu1 %v420_v28  ;;  %v1387_v28 = vld [vmem:[%s3006_s7 + $0x58] sm:$0xff] }
  0x44   : > { %919 = vmatprep.subr.bf16.mxu1 %v423_v30  ;;  %v1900_v30 = vld [vmem:[%s3003_s4 + $0x30] sm:$0xff]  }
  0x45   : > { %547 = vperm.xlu1 %1885, %v501_v3   ;;  %552 = vperm.xlu0 %1884, %v502_v4  }
  0x46   : > { %731 = vmatmul.mubr.bf16.gmra.mrb[8].mxu1 %v1888_v29  ;;  %691 = vmatmul.mubr.bf16.gmra.mrb[8].mxu0 %v1894_v35  ;;  %v1388_v29 = vld [vmem:[%s3006_s7 + $0x60] sm:$0xff] }
  0x47   : > { %920 = vmatpush1.bf16.msra.mxu1 %v422_v40  ;;  %740 = vmatprep.mubr.bf16.mxu1 %v3008_v0 }
  0x48   : > { %921 = vmatprep.subr.bf16.mxu1 %v425_v43  ;;  %700 = vmatprep.mubr.bf16.mxu0 %v3008_v0 }
  0x49   : > { %557 = vperm.xlu1 %1885, %v503_v6   ;;  %562 = vperm.xlu0 %1884, %v504_v7  }
  0x4b   : > { %922 = vmatpush1.bf16.msra.mxu1 %v424_v46 }
  0x4c   : > { %923 = vmatprep.subr.bf16.mxu1 %v427_v47 }
  0x4d   : > { %567 = vperm.xlu1 %1885, %v505_v8   ;;  %572 = vperm.xlu0 %1884, %v506_v9  }
  0x4e   : > { %741 = vmatmul.mubr.bf16.gmra.mrb[12].mxu1 %v1889_v50  ;;  %701 = vmatmul.mubr.bf16.gmra.mrb[12].mxu0 %v1896_v53 }
  0x4f   : > { %924 = vmatpush1.bf16.msra.mxu1 %v426_v56  ;;  %943 = vmatprep.mubr.bf16.mxu1 %v3008_v0 }
  0x50   : > { %925 = vmatprep.subr.bf16.mxu1 %v429_v57  ;;  %1552 = vmatprep.mubr.bf16.mxu0 %v3008_v0 }
  0x51   : > { %577 = vperm.xlu1 %1885, %v507_v11   ;;  %582 = vperm.xlu0 %1884, %v508_v12  }
  0x53   : > { %926 = vmatpush1.bf16.msra.mxu1 %v428_v62 }
  0x55   : > { %587 = vperm.xlu1 %1885, %v509_v13   ;;  %1394 = vperm.xlu0 %1884, %v1376_v14  }
  0x56   : > { %944 = vmatmul.mubr.bf16.vlgmr.msra.gmra.mrb[16].mxu1 %v1891_v63 }
  0x57   : > { %953 = vmatprep.mubr.bf16.mxu1 %v3008_v0 }
  0x59   : > { %1399 = vperm.xlu1 %1885, %v1377_v16   ;;  %1404 = vperm.xlu0 %1884, %v1378_v17  }
  0x5d   : > { %1409 = vperm.xlu1 %1885, %v1379_v18   ;;  %1414 = vperm.xlu0 %1884, %v1380_v19  }
  0x5e   : > { %954 = vmatmul.mubr.bf16.gmra.mrb[20].mxu1 %v1893_v5 }
  0x5f   : > { %963 = vmatprep.mubr.bf16.mxu1 %v3008_v0 }
  0x61   : > { %1419 = vperm.xlu1 %1885, %v1381_v21   ;;  %1424 = vperm.xlu0 %1884, %v1382_v22  }
  0x65   : > { %1429 = vperm.xlu1 %1885, %v1383_v23   ;;  %1434 = vperm.xlu0 %1884, %v1384_v24  }
  0x66   : > { %964 = vmatmul.mubr.bf16.gmra.mrb[24].mxu1 %v1895_v10 }
  0x67   : > { %973 = vmatprep.mubr.bf16.mxu1 %v3008_v0 }
  0x69   : > { %1439 = vperm.xlu1 %1885, %v1385_v26   ;;  %1444 = vperm.xlu0 %1884, %v1386_v27  }
  0x6d   : > { %1449 = vperm.xlu1 %1885, %v1387_v28   ;;  %1454 = vperm.xlu0 %1884, %v1388_v29  }
  0x6e   : > { %974 = vmatmul.mubr.bf16.gmra.mrb[28].mxu1 %v1897_v15 }
  0x6f   : > { %983 = vmatprep.mubr.bf16.mxu1 %v3008_v0 }
  0x71   : > { %1459 = vperm.xlu1 %1885, %v1389_v31   ;;  %1464 = vperm.xlu0 %1884, %v1390_v32  }
  0x75   : > { %1469 = vperm.xlu1 %1885, %v1391_v33  }
  0x76   : > { %984 = vmatmul.mubr.bf16.gmra.mrb[32].mxu1 %v1898_v20 }
  0x77   : > { %993 = vmatprep.mubr.bf16.mxu1 %v3008_v0 }
  0x7e   : > { %994 = vmatmul.mubr.bf16.gmra.mrb[36].mxu1 %v1899_v25 }
  0x7f   : > { %1003 = vmatprep.mubr.bf16.mxu1 %v3008_v0 }
  0x86   : > { %1004 = vmatmul.mubr.bf16.gmra.mrb[40].mxu1 %v1900_v30 }
  0x87   : > { %1013 = vmatprep.mubr.bf16.mxu1 %v3008_v0 }
  0x8e   : > { %1014 = vmatmul.mubr.bf16.gmra.mrb[44].mxu1 %v1901_v34 }
  0x90   : > { %v2351_v35 = vpop.permute.xlu0 %785  ;;  %v2353_v36 = vpop.permute.xlu1 %795 }
  0x94   : > { %v2355_v37 = vpop.permute.xlu0 %790  ;;  %v2357_v38 = vpop.permute.xlu1 %800 }
  0x98   : > { %v2359_v39 = vpop.permute.xlu0 %805  ;;  %v2361_v40 = vpop.permute.xlu1 %810 }
  0xa0   : > { %v2363_v41 = vpop.permute.xlu0 %815 }
  0xa4   : > { %v2365_v42 = vpop.permute.xlu1 %820  ;;  %v2367_v43 = vpop.permute.xlu0 %825 }
  0xa8   : > { %v2369_v44 = vpop.permute.xlu1 %830  ;;  %v2371_v45 = vpop.permute.xlu0 %835 }
  0xac   : > { %v2373_v46 = vpop.permute.xlu1 %840  ;;  %v2375_v47 = vpop.permute.xlu0 %845 }
  0xb0   : > { %v2377_v48 = vpop.permute.xlu1 %850  ;;  %v513_v49 = vpop.permute.xlu0 %512 }
  0xb4   : > { %v518_v50 = vpop.permute.xlu1 %517  ;;  %v2379_v51 = vpop.permute.xlu0 %855 }
  0xb8   : > { %v2381_v52 = vpop.permute.xlu1 %860  ;;  %v523_v61 = vpop.permute.xlu0 %522 }
  0xbc   : > { %v2383_v62 = vpop.permute.xlu1 %527  ;;  %v2385_v8 = vpop.permute.xlu0 %532 }
  0xc0   : > { %v2387_v9 = vpop.permute.xlu1 %537  ;;  %v2399_v18 = vpop.permute.xlu0 %542 }
  0xc4   : > { %v2401_v19 = vpop.permute.xlu1 %547  ;;  %v553_v28 = vpop.permute.xlu0 %552 }
  0xc8   : > { %v558_v29 = vpop.permute.xlu1 %557  ;;  %v563_v33 = vpop.permute.xlu0 %562 }
 0x109   : > { %v712_v53 = vpop.f32.mrb[0].mxu1  ;;  %v672_v54 = vpop.f32.mrb[0].mxu0 }
 0x10a   : > { %v714_v55 = vpop.f32.mrb[1].mxu1  ;;  %v674_v56 = vpop.f32.mrb[1].mxu0  ;;  %v2419_v31 = vadd.f32 %v712_v53, %v553_v28 }
 0x10b   : > { %v716_v57 = vpop.f32.mrb[2].mxu1  ;;  %v676_v58 = vpop.f32.mrb[2].mxu0  ;;  %v2421_v32 = vadd.f32 %v714_v55, %v553_v28 }
 0x10c   : > { %v718_v59 = vpop.f32.mrb[3].mxu1  ;;  %v678_v60 = vpop.f32.mrb[3].mxu0 }
 0x10d   : > { %3031 = vst [vmem:[#allocation9_spill] sm:$0xff] %v2421_v32  ;;  %v2437_v53 = vadd.f32 %v718_v59, %v558_v29  ;;  %v568_v55 = vpop.permute.xlu1 %567 }
 0x10f   : > { %3033 = vst [vmem:[#allocation11_spill] sm:$0xff] %v2437_v53 }
 0x111   : > { %v722_v63 = vpop.f32.mrb[4].mxu1  ;;  %v682_v1 = vpop.f32.mrb[4].mxu0 }
 0x112   : > { %v724_v2 = vpop.f32.mrb[5].mxu1  ;;  %v684_v3 = vpop.f32.mrb[5].mxu0  ;;  %v2446_v32 = vadd.f32 %v722_v63, %v563_v33 }
 0x113   : > { %v726_v4 = vpop.f32.mrb[6].mxu1  ;;  %v686_v5 = vpop.f32.mrb[6].mxu0 }
 0x114   : > { %v728_v6 = vpop.f32.mrb[7].mxu1  ;;  %v688_v7 = vpop.f32.mrb[7].mxu0  ;;  %3034 = vst [vmem:[#allocation12_spill] sm:$0xff] %v2446_v32  ;;  %v2464_v63 = vadd.f32 %v726_v4, %v568_v55 }
 0x116   : > { %3039 = vst [vmem:[#allocation17_spill] sm:$0xff] %v2464_v63 }
 0x119   : > { %v732_v10 = vpop.f32.mrb[8].mxu1  ;;  %v692_v11 = vpop.f32.mrb[8].mxu0 }
 0x11a   : > { %v2389_v12 = vpop.f32.mrb[9].mxu1  ;;  %v694_v13 = vpop.f32.mrb[9].mxu0 }
 0x11b   : > { %3024 = vst [vmem:[#allocation2_spill] sm:$0xff] %v2389_v12  ;;  %v2391_v14 = vpop.f32.mrb[10].mxu1  ;;  %v2393_v15 = vpop.f32.mrb[10].mxu0  ;;  %v2435_v12 = vadd.f32 %v676_v58, %v518_v50 }
 0x11c   : > { %3025 = vst [vmem:[#allocation3_spill] sm:$0xff] %v2391_v14  ;;  %v2395_v16 = vpop.f32.mrb[11].mxu1  ;;  %v2397_v17 = vpop.f32.mrb[11].mxu0 }
 0x11d   : > { %3026 = vst [vmem:[#allocation4_spill] sm:$0xff] %v2395_v16  ;;  %v2433_v16 = vadd.f32 %v674_v56, %v513_v49  ;;  %v2455_v56 = vadd.f32 %v724_v2, %v563_v33  ;;  %v2457_v58 = vpop.permute.xlu0 %572  ;;  %v2472_v2 = vadd.f32 %v728_v6, %v568_v55 }
 0x11e   : > { %3037 = vst [vmem:[#allocation15_spill] sm:$0xff] %v2457_v58 }
 0x11f   : > { %3036 = vst [vmem:[#allocation14_spill] sm:$0xff] %v2455_v56  ;;  %3041 = vst [vmem:[#allocation19_spill] sm:$0xff] %v2472_v2 }
 0x121   : > { %v2403_v20 = vpop.f32.mrb[12].mxu1  ;;  %v2405_v21 = vpop.f32.mrb[12].mxu0 }
 0x122   : > { %3027 = vst [vmem:[#allocation5_spill] sm:$0xff] %v2403_v20  ;;  %v2407_v22 = vpop.f32.mrb[13].mxu1  ;;  %v2409_v23 = vpop.f32.mrb[13].mxu0 }
 0x123   : > { %3028 = vst [vmem:[#allocation6_spill] sm:$0xff] %v2407_v22  ;;  %v2411_v24 = vpop.f32.mrb[14].mxu1  ;;  %v2413_v25 = vpop.f32.mrb[14].mxu0  ;;  %v2426_v22 = vadd.f32 %v672_v54, %v513_v49  ;;  %v2453_v49 = vadd.f32 %v682_v1, %v523_v61  ;;  %v2470_v1 = vadd.f32 %v686_v5, %v2383_v62 }
 0x124   : > { %3029 = vst [vmem:[#allocation7_spill] sm:$0xff] %v2411_v24  ;;  %v2415_v26 = vpop.f32.mrb[15].mxu1  ;;  %v2417_v27 = vpop.f32.mrb[15].mxu0  ;;  %v2428_v24 = vadd.f32 %v716_v57, %v558_v29  ;;  %v2444_v57 = vadd.f32 %v678_v60, %v518_v50  ;;  %v2462_v60 = vadd.f32 %v684_v3, %v523_v61  ;;  %v2479_v61 = vadd.f32 %v732_v10, %v2457_v58 }
 0x125   : > { %3030 = vst [vmem:[#allocation8_spill] sm:$0xff] %v2415_v26  ;;  %3035 = vst [vmem:[#allocation13_spill] sm:$0xff] %v2453_v49 }
 0x126   : > { %3032 = vst [vmem:[#allocation10_spill] sm:$0xff] %v2428_v24  ;;  %3038 = vst [vmem:[#allocation16_spill] sm:$0xff] %v2462_v60 }
 0x127   : > { %3040 = vst [vmem:[#allocation18_spill] sm:$0xff] %v2470_v1  ;;  %3043 = vst [vmem:[#allocation21_spill] sm:$0xff] %v2479_v61 }
 0x129   : > { %v945_v30 = vpop.f32.mrb[16].mxu1 }
 0x12a   : > { %v2424_v34 = vadd.f32 %v945_v30, %v2351_v35  ;;  %v947_v0 = vpop.f32.mrb[17].mxu1 }
 0x12b   : > { %v2431_v26 = vadd.f32 %v947_v0, %v2351_v35  ;;  %v949_v20 = vpop.f32.mrb[18].mxu1 }
 0x12c   : > { %v1024_v28 = vmul.f32 %v2424_v34, %v2424_v34  ;;  %v2442_v30 = vadd.f32 %v949_v20, %v2355_v37  ;;  %v951_v54 = vpop.f32.mrb[19].mxu1 }
 0x12d   : > { %v1025_v0 = vmul.f32 %v2431_v26, %v2431_v26  ;;  %v2451_v35 = vadd.f32 %v951_v54, %v2355_v37 }
 0x12e   : > { %v1056_v59 = vmul.f32 %v1024_v28, %v2424_v34  ;;  %v1026_v50 = vmul.f32 %v2442_v30, %v2442_v30  ;;  %v2476_v28 = vadd.f32 %v688_v7, %v2383_v62  ;;  %v2490_v62 = vadd.f32 %v694_v13, %v2385_v8 }
 0x12f   : > { %v1057_v20 = vmul.f32 %v1025_v0, %v2431_v26  ;;  %v1027_v37 = vmul.f32 %v2451_v35, %v2451_v35  ;;  %v2483_v0 = vadd.f32 %v692_v11, %v2385_v8  ;;  %v2498_v11 = vadd.f32 %v2393_v15, %v2387_v9 }
 0x130   : > { %v1088_v29 = vmul.f32 0.044715, %v1056_v59  ;;  %v1058_v33 = vmul.f32 %v1026_v50, %v2442_v30  ;;  %3042 = vst [vmem:[#allocation20_spill] sm:$0xff] %v2476_v28 }
 0x131   : > { %v1089_v3 = vmul.f32 0.044715, %v1057_v20  ;;  %v1059_v4 = vmul.f32 %v1027_v37, %v2451_v35  ;;  %v955_v54 = vpop.f32.mrb[20].mxu1 }
 0x132   : > { %v1120_v5 = vadd.f32 %v1088_v29, %v2424_v34  ;;  %v1090_v6 = vmul.f32 0.044715, %v1058_v33  ;;  %v2487_v55 = vadd.f32 %v955_v54, %v2353_v36  ;;  %v957_v59 = vpop.f32.mrb[21].mxu1 }
 0x133   : > { %v1121_v7 = vadd.f32 %v1089_v3, %v2431_v26  ;;  %v1091_v10 = vmul.f32 0.044715, %v1059_v4  ;;  %v2494_v50 = vadd.f32 %v957_v59, %v2353_v36  ;;  %v959_v20 = vpop.f32.mrb[22].mxu1 }
 0x134   : > { %v1152_v37 = vmul.f32 0.7978846, %v1120_v5  ;;  %v1122_v29 = vadd.f32 %v1090_v6, %v2442_v30  ;;  %v1028_v33 = vmul.f32 %v2487_v55, %v2487_v55  ;;  %v2504_v8 = vadd.f32 %v959_v20, %v2357_v38  ;;  %v961_v13 = vpop.f32.mrb[23].mxu1 }
 0x135   : > { %v1153_v3 = vmul.f32 0.7978846, %v1121_v7  ;;  %v1123_v4 = vadd.f32 %v1091_v10, %v2451_v35  ;;  %v1029_v36 = vmul.f32 %v2494_v50, %v2494_v50  ;;  %v2510_v54 = vadd.f32 %v961_v13, %v2357_v38 }
 0x136   : > { %1910 = vtanh.f32 %v1152_v37  ;;  %v1154_v15 = vmul.f32 0.7978846, %v1122_v29  ;;  %v1060_v5 = vmul.f32 %v1028_v33, %v2487_v55  ;;  %v1030_v6 = vmul.f32 %v2504_v8, %v2504_v8 }
 0x137   : > { %1912 = vtanh.f32 %v1153_v3  ;;  %v1155_v59 = vmul.f32 0.7978846, %v1123_v4  ;;  %v1061_v20 = vmul.f32 %v1029_v36, %v2494_v50  ;;  %v1031_v7 = vmul.f32 %v2510_v54, %v2510_v54 }
 0x138   : > { %1914 = vtanh.f32 %v1154_v15  ;;  %v1092_v10 = vmul.f32 0.044715, %v1060_v5  ;;  %v1062_v58 = vmul.f32 %v1030_v6, %v2504_v8  ;;  %v2521_v38 = vadd.f32 %v2397_v17, %v2387_v9 }
 0x139   : > { %1916 = vtanh.f32 %v1155_v59  ;;  %v1093_v37 = vmul.f32 0.044715, %v1061_v20  ;;  %v1063_v29 = vmul.f32 %v1031_v7, %v2510_v54  ;;  %v965_v33 = vpop.f32.mrb[24].mxu1  ;;  %v2526_v13 = vadd.f32 %v2405_v21, %v2399_v18 }
 0x13a   : > { %3044 = vst [vmem:[#allocation22_spill] sm:$0xff] %v2521_v38  ;;  %v1124_v3 = vadd.f32 %v1092_v10, %v2487_v55  ;;  %v1094_v4 = vmul.f32 0.044715, %v1062_v58  ;;  %v2530_v36 = vadd.f32 %v965_v33, %v2359_v39  ;;  %v967_v15 = vpop.f32.mrb[25].mxu1  ;;  %v2534_v9 = vadd.f32 %v2409_v23, %v2399_v18 }
 0x13b   : > { %v1125_v17 = vadd.f32 %v1093_v37, %v2494_v50  ;;  %v1095_v5 = vmul.f32 0.044715, %v1063_v29  ;;  %v2538_v6 = vadd.f32 %v967_v15, %v2359_v39  ;;  %v969_v59 = vpop.f32.mrb[26].mxu1  ;;  %v2542_v21 = vadd.f32 %v2413_v25, %v2401_v19 }
 0x13c   : > { %v1156_v58 = vmul.f32 0.7978846, %v1124_v3  ;;  %v1126_v20 = vadd.f32 %v1094_v4, %v2504_v8  ;;  %v1032_v7 = vmul.f32 %v2530_v36, %v2530_v36  ;;  %v2548_v18 = vadd.f32 %v969_v59, %v2361_v40  ;;  %v971_v23 = vpop.f32.mrb[27].mxu1 }
 0x13d   : > { %v1157_v10 = vmul.f32 0.7978846, %v1125_v17  ;;  %v1127_v37 = vadd.f32 %v1095_v5, %v2510_v54  ;;  %v1033_v39 = vmul.f32 %v2538_v6, %v2538_v6  ;;  %v2554_v29 = vadd.f32 %v971_v23, %v2361_v40 }
 0x13e   : > { %1918 = vtanh.f32 %v1156_v58  ;;  %v1158_v25 = vmul.f32 0.7978846, %v1126_v20  ;;  %v1064_v33 = vmul.f32 %v1032_v7, %v2530_v36  ;;  %v1034_v3 = vmul.f32 %v2548_v18, %v2548_v18 }
 0x13f   : > { %1920 = vtanh.f32 %v1157_v10  ;;  %v1159_v4 = vmul.f32 0.7978846, %v1127_v37  ;;  %v1065_v15 = vmul.f32 %v1033_v39, %v2538_v6  ;;  %v1035_v17 = vmul.f32 %v2554_v29, %v2554_v29 }
 0x140   : > { %v1911_v5 = vpop.eup %1910  ;;  %1922 = vtanh.f32 %v1158_v25  ;;  %v1096_v59 = vmul.f32 0.044715, %v1064_v33  ;;  %v1066_v40 = vmul.f32 %v1034_v3, %v2548_v18  ;;  %v2565_v58 = vadd.f32 %v2417_v27, %v2401_v19 }
 0x141   : > { %v1913_v20 = vpop.eup %1912  ;;  %v1216_v7 = vadd.f32 1.0, %v1911_v5  ;;  %1924 = vtanh.f32 %v1159_v4  ;;  %v1097_v23 = vmul.f32 0.044715, %v1065_v15  ;;  %v1067_v10 = vmul.f32 %v1035_v17, %v2554_v29  ;;  %v975_v37 = vpop.f32.mrb[28].mxu1 }
 0x142   : > { %v1915_v39 = vpop.eup %1914  ;;  %v1217_v2 = vadd.f32 1.0, %v1913_v20  ;;  %v1128_v56 = vadd.f32 %v1096_v59, %v2530_v36  ;;  %v1098_v61 = vmul.f32 0.044715, %v1066_v40  ;;  %v2570_v25 = vadd.f32 %v975_v37, %v2363_v41  ;;  %v977_v33 = vpop.f32.mrb[29].mxu1 }
 0x143   : > { %v1917_v3 = vpop.eup %1916  ;;  %v1248_v63 = vmul.f32 0.5, %v1216_v7  ;;  %v1218_v19 = vadd.f32 1.0, %v1915_v39  ;;  %v1129_v27 = vadd.f32 %v1097_v23, %v2538_v6  ;;  %v1099_v5 = vmul.f32 0.044715, %v1067_v10  ;;  %v979_v4 = vpop.f32.mrb[30].mxu1 }
 0x144   : > { %v1249_v15 = vmul.f32 0.5, %v1217_v2  ;;  %v1219_v32 = vadd.f32 1.0, %v1917_v3  ;;  %v1160_v17 = vmul.f32 0.7978846, %v1128_v56  ;;  %v1130_v53 = vadd.f32 %v1098_v61, %v2548_v18  ;;  %v981_v20 = vpop.f32.mrb[31].mxu1 }
 0x145   : > { %v1280_v59 = vmul.f32 %v1248_v63, %v2424_v34  ;;  %v1250_v40 = vmul.f32 0.5, %v1218_v19  ;;  %v1161_v14 = vmul.f32 0.7978846, %v1129_v27  ;;  %v1131_v37 = vadd.f32 %v1099_v5, %v2554_v29 }
 0x146   : > { %v1281_v24 = vmul.f32 %v1249_v15, %v2431_v26  ;;  %v1251_v7 = vmul.f32 0.5, %v1219_v32  ;;  %1926 = vtanh.f32 %v1160_v17  ;;  %v1162_v39 = vmul.f32 0.7978846, %v1130_v53 }
 0x147   : > { %v2578_v23 = vmul.f32 %v1280_v59, %v2426_v22  ;;  %v1282_v2 = vmul.f32 %v1250_v40, %v2442_v30  ;;  %1928 = vtanh.f32 %v1161_v14  ;;  %v1163_v56 = vmul.f32 0.7978846, %v1131_v37 }
 0x148   : > { %v1919_v61 = vpop.eup %1918  ;;  %v2582_v10 = vmul.f32 %v1281_v24, %v2433_v16  ;;  %v1283_v34 = vmul.f32 %v1251_v7, %v2451_v35  ;;  %1930 = vtanh.f32 %v1162_v39  ;;  %v1036_v26 = vmul.f32 %v2570_v25, %v2570_v25 }
 0x149   : > { %v1921_v32 = vpop.eup %1920  ;;  %v2588_v53 = vmul.f32 %v1282_v2, %v2435_v12  ;;  %v1220_v63 = vadd.f32 1.0, %v1919_v61  ;;  %1932 = vtanh.f32 %v1163_v56  ;;  %v2591_v30 = vadd.f32 %v977_v33, %v2363_v41  ;;  %v985_v14 = vpop.f32.mrb[32].mxu1 }
 0x14a   : > { %v1923_v3 = vpop.eup %1922  ;;  %v2594_v24 = vmul.f32 %v1283_v34, %v2444_v57  ;;  %v1221_v19 = vadd.f32 1.0, %v1921_v32  ;;  %v1068_v35 = vmul.f32 %v1036_v26, %v2570_v25  ;;  %v2598_v27 = vadd.f32 %v979_v4, %v2365_v42  ;;  %v2600_v5 = vpop.f32.mrb[33].mxu1 }
 0x14b   : > { %v1925_v15 = vpop.eup %1924  ;;  %v1252_v59 = vmul.f32 0.5, %v1220_v63  ;;  %v1222_v41 = vadd.f32 1.0, %v1923_v3  ;;  %v1037_v33 = vmul.f32 %v2591_v30, %v2591_v30  ;;  %v989_v40 = vpop.f32.mrb[34].mxu1  ;;  %v2611_v26 = vadd.f32 %v981_v20, %v2365_v42 }
 0x14c   : > { %v1253_v37 = vmul.f32 0.5, %v1221_v19  ;;  %v1223_v7 = vadd.f32 1.0, %v1925_v15  ;;  %v1100_v39 = vmul.f32 0.044715, %v1068_v35  ;;  %v1038_v2 = vmul.f32 %v2598_v27, %v2598_v27  ;;  %v991_v4 = vpop.f32.mrb[35].mxu1 }
 0x14d   : > { %v1284_v56 = vmul.f32 %v1252_v59, %v2487_v55  ;;  %v1254_v61 = vmul.f32 0.5, %v1222_v41  ;;  %v1069_v34 = vmul.f32 %v1037_v33, %v2591_v30  ;;  %v1039_v55 = vmul.f32 %v2611_v26, %v2611_v26 }
 0x14e   : > { %v1285_v32 = vmul.f32 %v1253_v37, %v2494_v50  ;;  %v1255_v63 = vmul.f32 0.5, %v1223_v7  ;;  %v1132_v3 = vadd.f32 %v1100_v39, %v2570_v25  ;;  %v1070_v19 = vmul.f32 %v1038_v2, %v2598_v27 }
 0x14f   : > { %v2617_v35 = vmul.f32 %v1284_v56, %v2453_v49  ;;  %v1286_v15 = vmul.f32 %v1254_v61, %v2504_v8  ;;  %v1101_v17 = vmul.f32 0.044715, %v1069_v34  ;;  %v1071_v8 = vmul.f32 %v1039_v55, %v2611_v26 }
 0x150   : > { %v1927_v59 = vpop.eup %1926  ;;  %v2623_v42 = vmul.f32 %v1285_v32, %v2462_v60  ;;  %v1287_v50 = vmul.f32 %v1255_v63, %v2510_v54  ;;  %v1164_v20 = vmul.f32 0.7978846, %v1132_v3  ;;  %v1102_v41 = vmul.f32 0.044715, %v1070_v19 }
 0x151   : > { %v1929_v33 = vpop.eup %1928  ;;  %v2627_v37 = vmul.f32 %v1286_v15, %v2470_v1  ;;  %v1224_v7 = vadd.f32 1.0, %v1927_v59  ;;  %v1133_v39 = vadd.f32 %v1101_v17, %v2591_v30  ;;  %v995_v2 = vpop.f32.mrb[36].mxu1  ;;  %v1103_v49 = vmul.f32 0.044715, %v1071_v8 }
 0x152   : > { %v1931_v56 = vpop.eup %1930  ;;  %v2632_v61 = vmul.f32 %v1287_v50, %v2476_v28  ;;  %v1225_v34 = vadd.f32 1.0, %v1929_v33  ;;  %1934 = vtanh.f32 %v1164_v20  ;;  %v1134_v54 = vadd.f32 %v1102_v41, %v2598_v27  ;;  %v997_v32 = vpop.f32.mrb[37].mxu1 }
 0x153   : > { %v1933_v63 = vpop.eup %1932  ;;  %v1256_v19 = vmul.f32 0.5, %v1224_v7  ;;  %v1226_v15 = vadd.f32 1.0, %v1931_v56  ;;  %v1165_v59 = vmul.f32 0.7978846, %v1133_v39  ;;  %v999_v17 = vpop.f32.mrb[38].mxu1  ;;  %v2639_v20 = vadd.f32 %v985_v14, %v2367_v43 }
 0x154   : > { %v1257_v1 = vmul.f32 0.5, %v1225_v34  ;;  %v1227_v55 = vadd.f32 1.0, %v1933_v63  ;;  %v1166_v60 = vmul.f32 0.7978846, %v1134_v54  ;;  %v2641_v41 = vpop.f32.mrb[39].mxu1  ;;  %v1135_v7 = vadd.f32 %v1103_v49, %v2611_v26 }
 0x155   : > { %v1288_v50 = vmul.f32 %v1256_v19, %v2530_v36  ;;  %v1258_v28 = vmul.f32 0.5, %v1226_v15  ;;  %1936 = vtanh.f32 %v1165_v59  ;;  %v1040_v36 = vmul.f32 %v2639_v20, %v2639_v20 }
 0x156   : > { %v1289_v33 = vmul.f32 %v1257_v1, %v2538_v6  ;;  %v1259_v3 = vmul.f32 0.5, %v1227_v55  ;;  %1938 = vtanh.f32 %v1166_v60  ;;  %v2653_v14 = vadd.f32 %v2600_v5, %v2367_v43 }
 0x157   : > { %v2646_v39 = vmul.f32 %v1288_v50, %v2483_v0  ;;  %v1290_v8 = vmul.f32 %v1258_v28, %v2548_v18  ;;  %v1167_v60 = vmul.f32 0.7978846, %v1135_v7  ;;  %v2660_v49 = vadd.f32 %v989_v40, %v2369_v44 }
 0x158   : > { %v2656_v56 = vmul.f32 %v1289_v33, %v2490_v62  ;;  %v1291_v1 = vmul.f32 %v1259_v3, %v2554_v29  ;;  %v1072_v28 = vmul.f32 %v1040_v36, %v2639_v20  ;;  %v1041_v18 = vmul.f32 %v2653_v14, %v2653_v14 }
 0x159   : > { %v2663_v6 = vmul.f32 %v1290_v8, %v2498_v11  ;;  %v2669_v43 = vadd.f32 %v991_v4, %v2369_v44  ;;  %v2671_v5 = vpop.f32.mrb[40].mxu1  ;;  %1940 = vtanh.f32 %v1167_v60  ;;  %v1042_v29 = vmul.f32 %v2660_v49, %v2660_v49 }
 0x15a   : > { %v2674_v34 = vmul.f32 %v1291_v1, %v2521_v38  ;;  %v1345_v40 = vpack.c.bf16 %v2594_v24, %v2582_v10  ;;  %v2680_v54 = vpop.f32.mrb[41].mxu1  ;;  %v1104_v3 = vmul.f32 0.044715, %v1072_v28  ;;  %v1073_v44 = vmul.f32 %v1041_v18, %v2653_v14 }
 0x15b   : > { %v1043_v4 = vmul.f32 %v2669_v43, %v2669_v43  ;;  %v1009_v19 = vpop.f32.mrb[42].mxu1  ;;  %v1074_v59 = vmul.f32 %v1042_v29, %v2660_v49  ;;  %v2689_v55 = vadd.f32 %v995_v2, %v2371_v45  ;;  %v2692_v10 = vadd.f32 %v997_v32, %v2371_v45 }
 0x15c   : > { %v1935_v15 = vpop.eup %1934  ;;  %1520 = vmatprep.subr.bf16.mxu0 %v1345_v40  ;;  %v2695_v24 = vadd.f32 %v999_v17, %v2373_v46  ;;  %v1011_v50 = vpop.f32.mrb[43].mxu1  ;;  %v1136_v7 = vadd.f32 %v1104_v3, %v2639_v20  ;;  %v1105_v8 = vmul.f32 0.044715, %v1073_v44  ;;  %v3045_v1 = vpack.c.bf16 %v2588_v53, %v2578_v23 }
 0x15d   : > { %v1228_v33 = vadd.f32 1.0, %v1935_v15  ;;  %v1075_v36 = vmul.f32 %v1043_v4, %v2669_v43  ;;  %v1106_v60 = vmul.f32 0.044715, %v1074_v59  ;;  %v1044_v2 = vmul.f32 %v2689_v55, %v2689_v55 }
 0x15e   : > { %1521 = vmatpush1.bf16.msra.mxu0 %v3045_v1  ;;  %v1045_v45 = vmul.f32 %v2692_v10, %v2692_v10  ;;  %v1046_v32 = vmul.f32 %v2695_v24, %v2695_v24  ;;  %v1168_v18 = vmul.f32 0.7978846, %v1136_v7  ;;  %v1137_v29 = vadd.f32 %v1105_v8, %v2653_v14 }
 0x15f   : > { %v2708_v17 = vpop.eup %1936  ;;  %v1260_v28 = vmul.f32 0.5, %v1228_v33  ;;  %v1107_v40 = vmul.f32 0.044715, %v1075_v36  ;;  %v1138_v23 = vadd.f32 %v1106_v60, %v2660_v49  ;;  %v1076_v53 = vmul.f32 %v1044_v2, %v2689_v55 }
 0x160   : > { %v1939_v3 = vpop.eup %1938  ;;  %v1077_v44 = vmul.f32 %v1045_v45, %v2692_v10  ;;  %v1078_v4 = vmul.f32 %v1046_v32, %v2695_v24  ;;  %1942 = vtanh.f32 %v1168_v18  ;;  %v1169_v1 = vmul.f32 0.7978846, %v1137_v29 }
 0x161   : > { %v2716_v15 = vmul.f32 %v1260_v28, %v2570_v25  ;;  %v1230_v59 = vadd.f32 1.0, %v1939_v3  ;;  %v1015_v33 = vpop.f32.mrb[44].mxu1  ;;  %v1170_v7 = vmul.f32 0.7978846, %v1138_v23  ;;  %v1139_v8 = vadd.f32 %v1107_v40, %v2669_v43 }
 0x162   : > { %v1108_v36 = vmul.f32 0.044715, %v1076_v53  ;;  %v1109_v63 = vmul.f32 0.044715, %v1077_v44  ;;  %1944 = vtanh.f32 %v1169_v1  ;;  %v1110_v60 = vmul.f32 0.044715, %v1078_v4 }
 0x163   : > { %v1262_v38 = vmul.f32 0.5, %v1230_v59  ;;  %v2721_v2 = vadd.f32 %v2641_v41, %v2373_v46  ;;  %v1017_v45 = vpop.f32.mrb[45].mxu1  ;;  %v2723_v32 = vpop.eup %1940  ;;  %1946 = vtanh.f32 %v1170_v7  ;;  %v1171_v25 = vmul.f32 0.7978846, %v1139_v8 }
 0x164   : > { %v1140_v28 = vadd.f32 %v1108_v36, %v2689_v55  ;;  %v1141_v18 = vadd.f32 %v1109_v63, %v2692_v10  ;;  %v2727_v29 = vpop.f32.mrb[46].mxu1  ;;  %v1142_v3 = vadd.f32 %v1110_v60, %v2695_v24  ;;  %v1347_v41 = vpack.c.bf16 %v2632_v61, %v2623_v42 }
 0x165   : > { %v2730_v40 = vmul.f32 %v1262_v38, %v2598_v27  ;;  %v1047_v46 = vmul.f32 %v2721_v2, %v2721_v2  ;;  %v2737_v23 = vpop.f32.mrb[47].mxu1  ;;  %1948 = vtanh.f32 %v1171_v25  ;;  %v2741_v63 = vadd.f32 %v2671_v5, %v2375_v47 }
 0x166   : > { %v1172_v53 = vmul.f32 0.7978846, %v1140_v28  ;;  %v1173_v44 = vmul.f32 0.7978846, %v1141_v18  ;;  %v1174_v4 = vmul.f32 0.7978846, %v1142_v3  ;;  %1522 = vmatprep.subr.bf16.mxu0 %v1347_v41  ;;  %v2746_v27 = vadd.f32 %v2680_v54, %v2375_v47 }
 0x167   : > { %v1079_v38 = vmul.f32 %v1047_v46, %v2721_v2  ;;  %v2749_v59 = vadd.f32 %v1009_v19, %v2377_v48  ;;  %v3046_v42 = vpack.c.bf16 %v2627_v37, %v2617_v35  ;;  %v1048_v61 = vmul.f32 %v2741_v63, %v2741_v63 }
 0x168   : > { %1950 = vtanh.f32 %v1172_v53  ;;  %v2757_v5 = vadd.f32 %v1011_v50, %v2377_v48  ;;  %v1349_v1 = vpack.c.bf16 %v2674_v34, %v2656_v56  ;;  %v1049_v54 = vmul.f32 %v2746_v27, %v2746_v27 }
 0x169   : > { %1523 = vmatpush1.bf16.msra.mxu0 %v3046_v42  ;;  %1952 = vtanh.f32 %v1173_v44  ;;  %v1111_v47 = vmul.f32 0.044715, %v1079_v38  ;;  %v1050_v19 = vmul.f32 %v2749_v59, %v2749_v59  ;;  %v1080_v35 = vmul.f32 %v1048_v61, %v2741_v63 }
 0x16a   : > { %1954 = vtanh.f32 %v1174_v4  ;;  %v1051_v37 = vmul.f32 %v2757_v5, %v2757_v5  ;;  %1524 = vmatprep.subr.bf16.mxu0 %v1349_v1  ;;  %v2769_v48 = vadd.f32 %v1015_v33, %v2379_v51  ;;  %v1943_v50 = vpop.eup %1942  ;;  %v1081_v34 = vmul.f32 %v1049_v54, %v2746_v27 }
 0x16b   : > { %v1143_v56 = vadd.f32 %v1111_v47, %v2721_v2  ;;  %v1082_v7 = vmul.f32 %v1050_v19, %v2749_v59  ;;  %v2775_v8 = vadd.f32 %v1017_v45, %v2379_v51  ;;  %v1232_v36 = vadd.f32 1.0, %v1943_v50 }
 0x16c   : > { %v1112_v60 = vmul.f32 0.044715, %v1080_v35  ;;  %v1083_v25 = vmul.f32 %v1051_v37, %v2757_v5  ;;  %v3047_v28 = vpack.c.bf16 %v2663_v6, %v2646_v39  ;;  %v1052_v33 = vmul.f32 %v2769_v48, %v2769_v48  ;;  %v1945_v18 = vpop.eup %1944 }
 0x16d   : > { %v1175_v3 = vmul.f32 0.7978846, %v1143_v56  ;;  %v1113_v46 = vmul.f32 0.044715, %v1081_v34  ;;  %v1114_v41 = vmul.f32 0.044715, %v1082_v7  ;;  %v1053_v53 = vmul.f32 %v2775_v8, %v2775_v8  ;;  %v1947_v51 = vpop.eup %1946 }
 0x16e   : > { %1525 = vmatpush1.bf16.msra.mxu0 %v3047_v28  ;;  %v1264_v45 = vmul.f32 0.5, %v1232_v36  ;;  %v1144_v44 = vadd.f32 %v1112_v60, %v2741_v63  ;;  %v1115_v4 = vmul.f32 0.044715, %v1083_v25  ;;  %v1084_v38 = vmul.f32 %v1052_v33, %v2769_v48 }
 0x16f   : > { %v1234_v42 = vadd.f32 1.0, %v1947_v51  ;;  %1956 = vtanh.f32 %v1175_v3  ;;  %v1145_v39 = vadd.f32 %v1113_v46, %v2746_v27  ;;  %v1146_v6 = vadd.f32 %v1114_v41, %v2749_v59  ;;  %v1949_v61 = vpop.eup %1948 }
 0x170   : > { %v1296_v1 = vmul.f32 %v1264_v45, %v2639_v20  ;;  %v1176_v47 = vmul.f32 0.7978846, %v1144_v44  ;;  %v1147_v54 = vadd.f32 %v1115_v4, %v2757_v5  ;;  %v1116_v19 = vmul.f32 0.044715, %v1084_v38 }
 0x171   : > { %v1266_v35 = vmul.f32 0.5, %v1234_v42  ;;  %v1177_v37 = vmul.f32 0.7978846, %v1145_v39  ;;  %v1178_v50 = vmul.f32 0.7978846, %v1146_v6  ;;  %v1085_v56 = vmul.f32 %v1053_v53, %v2775_v8 }
 0x172   : > { %v1951_v34 = vpop.eup %1950  ;;  %1958 = vtanh.f32 %v1176_v47  ;;  %v1179_v7 = vmul.f32 0.7978846, %v1147_v54  ;;  %v1148_v36 = vadd.f32 %v1116_v19, %v2769_v48  ;;  %v2795_v60 = vadd.f32 %v2727_v29, %v2381_v52 }
 0x173   : > { %v1953_v25 = vpop.eup %1952  ;;  %v1298_v20 = vmul.f32 %v1266_v35, %v2660_v49  ;;  %v1236_v28 = vadd.f32 1.0, %v1951_v34  ;;  %1960 = vtanh.f32 %v1177_v37  ;;  %v1117_v33 = vmul.f32 0.044715, %v1085_v56 }
 0x174   : > { %v1955_v3 = vpop.eup %1954  ;;  %1962 = vtanh.f32 %v1178_v50  ;;  %v1180_v46 = vmul.f32 0.7978846, %v1148_v36  ;;  %v1054_v41 = vmul.f32 %v2795_v60, %v2795_v60  ;;  %v2802_v53 = vadd.f32 %v2737_v23, %v2381_v52 }
 0x175   : > { %v1268_v51 = vmul.f32 0.5, %v1236_v28  ;;  %v1238_v45 = vadd.f32 1.0, %v1955_v3  ;;  %1964 = vtanh.f32 %v1179_v7  ;;  %v1149_v29 = vadd.f32 %v1117_v33, %v2775_v8 }
 0x176   : > { %1966 = vtanh.f32 %v1180_v46  ;;  %v1086_v49 = vmul.f32 %v1054_v41, %v2795_v60  ;;  %v1055_v44 = vmul.f32 %v2802_v53, %v2802_v53  ;;  %v1229_v4 = vadd.f32 1.0, %v2708_v17  ;;  %v578_v41 = vpop.permute.xlu1 %577 }
 0x177   : > { %v1300_v38 = vmul.f32 %v1268_v51, %v2689_v55  ;;  %v1270_v42 = vmul.f32 0.5, %v1238_v45  ;;  %v1181_v39 = vmul.f32 0.7978846, %v1149_v29  ;;  %v1231_v52 = vadd.f32 1.0, %v2723_v32 }
 0x178   : > { %v1118_v23 = vmul.f32 0.044715, %v1086_v49  ;;  %v1087_v6 = vmul.f32 %v1055_v44, %v2802_v53  ;;  %v1261_v47 = vmul.f32 0.5, %v1229_v4  ;;  %v1324_v54 = vmul.f32 %v2716_v15, %v2526_v13 }
 0x179   : > { %v1957_v19 = vpop.eup %1956  ;;  %v1302_v35 = vmul.f32 %v1270_v42, %v2695_v24  ;;  %1968 = vtanh.f32 %v1181_v39  ;;  %v1263_v37 = vmul.f32 0.5, %v1231_v52  ;;  %v1326_v17 = vmul.f32 %v2730_v40, %v2542_v21 }
 0x17a   : > { %v1150_v55 = vadd.f32 %v1118_v23, %v2795_v60  ;;  %v1119_v50 = vmul.f32 0.044715, %v1087_v6  ;;  %v1293_v32 = vmul.f32 %v1261_v47, %v2591_v30  ;;  %v1233_v56 = vadd.f32 1.0, %v1945_v18  ;;  %v3048_v18 = vld [vmem:[#allocation10_spill] sm:$0xff]  ;;  %v3049_v6 = vld [vmem:[#allocation3_spill] sm:$0xff] }
 0x17b   : > { %v1295_v34 = vmul.f32 %v1263_v37, %v2611_v26  ;;  %v1350_v7 = vpack.c.bf16 %v1326_v17, %v1324_v54  ;;  %v1235_v36 = vadd.f32 1.0, %v1949_v61  ;;  %v1328_v15 = vmul.f32 %v1296_v1, %v2419_v31 }
 0x17c   : > { %v1959_v28 = vpop.eup %1958  ;;  %v1182_v33 = vmul.f32 0.7978846, %v1150_v55  ;;  %v1151_v24 = vadd.f32 %v1119_v50, %v2802_v53  ;;  %v1325_v3 = vmul.f32 %v1293_v32, %v2534_v9  ;;  %v1265_v46 = vmul.f32 0.5, %v1233_v56  ;;  %v3050_v55 = vld [vmem:[#allocation9_spill] sm:$0xff] }
 0x17d   : > { %v1961_v40 = vpop.eup %1960  ;;  %v1240_v51 = vadd.f32 1.0, %v1959_v28  ;;  %v1327_v45 = vmul.f32 %v1295_v34, %v2565_v58  ;;  %v1267_v30 = vmul.f32 0.5, %v1235_v36  ;;  %v1330_v29 = vmul.f32 %v1298_v20, %v3048_v18  ;;  %v3052_v34 = vld [vmem:[#allocation12_spill] sm:$0xff]  ;;  %v3053_v36 = vld [vmem:[#allocation17_spill] sm:$0xff] }
 0x17e   : > { %v1963_v26 = vpop.eup %1962  ;;  %1970 = vtanh.f32 %v1182_v33  ;;  %v1183_v61 = vmul.f32 0.7978846, %v1151_v24  ;;  %v1297_v1 = vmul.f32 %v1265_v46, %v2653_v14  ;;  %v1237_v49 = vadd.f32 1.0, %v1953_v25  ;;  %v3051_v25 = vld [vmem:[#allocation11_spill] sm:$0xff] }
 0x17f   : > { %v1965_v44 = vpop.eup %1964  ;;  %v1272_v4 = vmul.f32 0.5, %v1240_v51  ;;  %v1242_v42 = vadd.f32 1.0, %v1963_v26  ;;  %v1351_v39 = vpack.c.bf16 %v1327_v45, %v1325_v3  ;;  %v1299_v52 = vmul.f32 %v1267_v30, %v2669_v43  ;;  %v3054_v30 = vld [vmem:[#allocation21_spill] sm:$0xff] }
 0x180   : > { %v1967_v23 = vpop.eup %1966  ;;  %v2828_v47 = vadd.f32 %v3049_v6, %v578_v41  ;;  %1972 = vtanh.f32 %v1183_v61  ;;  %v1352_v54 = vpack.c.bf16 %v1330_v29, %v1328_v15  ;;  %v1239_v37 = vadd.f32 1.0, %v1957_v19  ;;  %v3056_v61 = vld [vmem:[#allocation19_spill] sm:$0xff] }
 0x181   : > { %v1304_v20 = vmul.f32 %v1272_v4, %v2741_v63  ;;  %v1274_v17 = vmul.f32 0.5, %v1242_v42  ;;  %1526 = vmatprep.subr.bf16.mxu0 %v1351_v39  ;;  %v1329_v14 = vmul.f32 %v1297_v1, %v3050_v55  ;;  %v1331_v50 = vmul.f32 %v1299_v52, %v3051_v25  ;;  %v3057_v42 = vld [vmem:[#allocation15_spill] sm:$0xff]  ;;  %v3059_v52 = vld [vmem:[#allocation4_spill] sm:$0xff] }
 0x182   : > { %1527 = vmatpush1.bf16.msra.mxu0 %v1350_v7  ;;  %v1269_v32 = vmul.f32 0.5, %v1237_v49  ;;  %v1271_v56 = vmul.f32 0.5, %v1239_v37  ;;  %v1332_v43 = vmul.f32 %v1300_v38, %v3052_v34  ;;  %v1334_v28 = vmul.f32 %v1302_v35, %v3053_v36  ;;  %v3055_v35 = vld [vmem:[#allocation14_spill] sm:$0xff]  ;;  %v583_v37 = vpop.permute.xlu0 %582 }
 0x183   : > { %v1969_v33 = vpop.eup %1968  ;;  %v1306_v24 = vmul.f32 %v1274_v17, %v2749_v59  ;;  %v1244_v15 = vadd.f32 1.0, %v1967_v23  ;;  %v1353_v19 = vpack.c.bf16 %v1331_v50, %v1329_v14  ;;  %v1241_v3 = vadd.f32 1.0, %v1961_v40  ;;  %v588_v50 = vpop.permute.xlu1 %587 }
 0x184   : > { %v1301_v63 = vmul.f32 %v1269_v32, %v2692_v10  ;;  %v1303_v46 = vmul.f32 %v1271_v56, %v2721_v2  ;;  %v1354_v51 = vpack.c.bf16 %v1334_v28, %v1332_v43  ;;  %v1243_v45 = vadd.f32 1.0, %v1965_v44  ;;  %v3058_v44 = vld [vmem:[#allocation2_spill] sm:$0xff] }
 0x185   : > { %1528 = vmatprep.subr.bf16.mxu0 %v1353_v19  ;;  %v1273_v7 = vmul.f32 0.5, %v1241_v3  ;;  %v1336_v29 = vmul.f32 %v1304_v20, %v3054_v30  ;;  %v1338_v38 = vmul.f32 %v1306_v24, %v2828_v47  ;;  %v1245_v49 = vadd.f32 1.0, %v1969_v33 }
 0x186   : > { %1529 = vmatpush1.bf16.msra.mxu0 %v1352_v54  ;;  %v1333_v26 = vmul.f32 %v1301_v63, %v3055_v35  ;;  %v1335_v59 = vmul.f32 %v1303_v46, %v3056_v61  ;;  %v1275_v1 = vmul.f32 0.5, %v1243_v45  ;;  %v1276_v40 = vmul.f32 0.5, %v1244_v15  ;;  %v3062_v46 = vld [vmem:[#allocation6_spill] sm:$0xff] }
 0x187   : > { %v1305_v10 = vmul.f32 %v1273_v7, %v2746_v27  ;;  %v1356_v4 = vpack.c.bf16 %v1338_v38, %v1336_v29  ;;  %v2845_v39 = vadd.f32 %v3058_v44, %v3057_v42  ;;  %v2848_v23 = vadd.f32 %v3059_v52, %v578_v41  ;;  %v3060_v41 = vld [vmem:[#allocation5_spill] sm:$0xff]  ;;  %v1908_v42 = vld [vmem:[%s3005_s6 + $0x30] sm:$0xff]   ;;  %v1395_v52 = vpop.permute.xlu0 %1394 }
 0x188   : > { %v1971_v2 = vpop.eup %1970  ;;  %v1355_v6 = vpack.c.bf16 %v1335_v59, %v1333_v26  ;;  %v1307_v54 = vmul.f32 %v1275_v1, %v2757_v5  ;;  %v1277_v17 = vmul.f32 0.5, %v1245_v49  ;;  %v1308_v56 = vmul.f32 %v1276_v40, %v2769_v48  ;;  %v3061_v5 = vld [vmem:[#allocation7_spill] sm:$0xff]  ;;  %v3063_v48 = vld [vmem:[#allocation8_spill] sm:$0xff]  ;;  %v1902_v1 = vld [vmem:[%s3005_s6] sm:$0xff]  }
 0x189   : > { %v1246_v20 = vadd.f32 1.0, %v1971_v2  ;;  %v1337_v27 = vmul.f32 %v1305_v10, %v2845_v39  ;;  %v2855_v33 = vadd.f32 %v3060_v41, %v583_v37  ;;  %v2858_v15 = vadd.f32 %v3061_v5, %v588_v50  ;;  %v1904_v40 = vld [vmem:[%s3005_s6 + $0x10] sm:$0xff]   ;;  %v1905_v10 = vld [vmem:[%s3005_s6 + $0x18] sm:$0xff]   ;;  %v1907_v2 = vld [vmem:[%s3005_s6 + $0x28] sm:$0xff]  }
 0x18a   : > { %v1973_v14 = vpop.eup %1972  ;;  %1530 = vmatprep.subr.bf16.mxu0 %v1355_v6  ;;  %v1339_v32 = vmul.f32 %v1307_v54, %v2848_v23  ;;  %v1309_v63 = vmul.f32 %v1277_v17, %v2775_v8  ;;  %v2863_v45 = vadd.f32 %v3062_v46, %v583_v37  ;;  %v2866_v7 = vadd.f32 %v3063_v48, %v588_v50  ;;  %v1909_v44 = vld [vmem:[%s3005_s6 + $0x38] sm:$0xff]  }
 0x18b   : > { %v1278_v43 = vmul.f32 0.5, %v1246_v20  ;;  %1531 = vmatpush1.bf16.msra.mxu0 %v1354_v51  ;;  %v1247_v28 = vadd.f32 1.0, %v1973_v14  ;;  %v1340_v29 = vmul.f32 %v1308_v56, %v2855_v33  ;;  %v3064_v49 = vmov 0   ;;  %v1400_v20 = vpop.permute.xlu1 %1399  ;;  %v3065_v46 = vld [vmem:[#allocation13_spill] sm:$0xff] }
 0x18c   : > { %v1357_v24 = vpack.c.bf16 %v1339_v32, %v1337_v27  ;;  %v1341_v26 = vmul.f32 %v1309_v63, %v2863_v45 }
 0x18d   : > { %v1310_v19 = vmul.f32 %v1278_v43, %v2795_v60  ;;  %v1279_v3 = vmul.f32 0.5, %v1247_v28 }
 0x18e   : > { %1532 = vmatprep.subr.bf16.mxu0 %v1357_v24  ;;  %v1405_v24 = vpop.permute.xlu0 %1404 }
 0x18f   : > { %1533 = vmatpush1.bf16.msra.mxu0 %v1356_v4  ;;  %v1311_v51 = vmul.f32 %v1279_v3, %v2802_v53  ;;  %v1342_v38 = vmul.f32 %v1310_v19, %v2858_v15  ;;  %v1903_v53 = vld [vmem:[%s3005_s6 + $0x8] sm:$0xff]   ;;  %v1906_v4 = vld [vmem:[%s3005_s6 + $0x20] sm:$0xff]  }
 0x191   : > { %v1343_v60 = vmul.f32 %v1311_v51, %v2866_v7  ;;  %v1358_v59 = vpack.c.bf16 %v1342_v38, %v1340_v29  ;;  %v3066_v29 = vld [vmem:[#allocation16_spill] sm:$0xff] }
 0x193   : > { %v1359_v8 = vpack.c.bf16 %v1343_v60, %v1341_v26  ;;  %v3067_v26 = vld [vmem:[#allocation18_spill] sm:$0xff] }
 0x195   : > { %1534 = vmatprep.subr.bf16.mxu0 %v1359_v8 }
 0x196   : > { %1535 = vmatpush1.bf16.msra.mxu0 %v1358_v59  ;;  %v3068_v59 = vld [vmem:[#allocation20_spill] sm:$0xff] }
 0x199   : > { %1553 = vmatmul.mubr.bf16.vlgmr.msra.gmra.mrb[16].mxu0 %v1902_v1  ;;  %v1415_v1 = vpop.permute.xlu0 %1414 }
 0x19a   : > { %1562 = vmatprep.mubr.bf16.mxu0 %v3064_v49 }
 0x1a1   : > { %1563 = vmatmul.mubr.bf16.gmra.mrb[20].mxu0 %v1903_v53 }
 0x1a2   : > { %1572 = vmatprep.mubr.bf16.mxu0 %v3064_v49 }
 0x1a9   : > { %1573 = vmatmul.mubr.bf16.gmra.mrb[24].mxu0 %v1904_v40 }
 0x1aa   : > { %1582 = vmatprep.mubr.bf16.mxu0 %v3064_v49 }
 0x1b1   : > { %1583 = vmatmul.mubr.bf16.gmra.mrb[28].mxu0 %v1905_v10 }
 0x1b2   : > { %1592 = vmatprep.mubr.bf16.mxu0 %v3064_v49 }
 0x1b9   : > { %1593 = vmatmul.mubr.bf16.gmra.mrb[32].mxu0 %v1906_v4 }
 0x1ba   : > { %1602 = vmatprep.mubr.bf16.mxu0 %v3064_v49 }
 0x1c1   : > { %1603 = vmatmul.mubr.bf16.gmra.mrb[36].mxu0 %v1907_v2 }
 0x1c2   : > { %1612 = vmatprep.mubr.bf16.mxu0 %v3064_v49 }
 0x1c9   : > { %1613 = vmatmul.mubr.bf16.gmra.mrb[40].mxu0 %v1908_v42 }
 0x1ca   : > { %1622 = vmatprep.mubr.bf16.mxu0 %v3064_v49 }
 0x1d1   : > { %1623 = vmatmul.mubr.bf16.gmra.mrb[44].mxu0 %v1909_v44 }
 0x26c   : > { %v1554_v6 = vpop.f32.mrb[16].mxu0 }
 0x26d   : > { %v1555_v54 = vadd.f32 %v1554_v6, %v1395_v52  ;;  %v1556_v37 = vpop.f32.mrb[17].mxu0 }
 0x26e   : > { %v1557_v17 = vadd.f32 %v1556_v37, %v1395_v52  ;;  %v1558_v14 = vpop.f32.mrb[18].mxu0 }
 0x26f   : > { %v1633_v50 = vadd.f32 %v1555_v54, %v2426_v22  ;;  %v1559_v27 = vadd.f32 %v1558_v14, %v1400_v20  ;;  %v1560_v32 = vpop.f32.mrb[19].mxu0  ;;  %v1425_v14 = vpop.permute.xlu0 %1424 }
 0x270   : > { %v1634_v56 = vadd.f32 %v1557_v17, %v2433_v16  ;;  %v1561_v43 = vadd.f32 %v1560_v32, %v1400_v20  ;;  %v1410_v16 = vpop.permute.xlu1 %1409  ;;  %v3069_v20 = vld [vmem:[#allocation22_spill] sm:$0xff] }
 0x271   : > { %1665 = vst [vmem:[%s2908_s21] sm:$0xff] %v1633_v50  ;;  %v1635_v28 = vadd.f32 %v1559_v27, %v2435_v12 }
 0x272   : > { %1667 = vst.msk [vmem:[%s2908_s21 + $0x8] sm:$0xff] %vm1666_vm0, %v1634_v56  ;;  %v1636_v41 = vadd.f32 %v1561_v43, %v2444_v57 }
 0x273   : > { %1668 = vst [vmem:[%s2908_s21 + $0x10] sm:$0xff] %v1635_v28 }
 0x274   : > { %1669 = vst.msk [vmem:[%s2908_s21 + $0x18] sm:$0xff] %vm1666_vm0, %v1636_v41  ;;  %v1564_v22 = vpop.f32.mrb[20].mxu0  ;;  %v1420_v10 = vpop.permute.xlu1 %1419 }
 0x275   : > { %v1565_v5 = vadd.f32 %v1564_v22, %v1405_v24  ;;  %v1566_v19 = vpop.f32.mrb[21].mxu0 }
 0x276   : > { %v1567_v3 = vadd.f32 %v1566_v19, %v1405_v24  ;;  %v1568_v63 = vpop.f32.mrb[22].mxu0  ;;  %v1435_v19 = vpop.permute.xlu0 %1434 }
 0x277   : > { %v1637_v12 = vadd.f32 %v1565_v5, %v3065_v46  ;;  %v1569_v48 = vadd.f32 %v1568_v63, %v1410_v16  ;;  %v1570_v51 = vpop.f32.mrb[23].mxu0 }
 0x278   : > { %v1638_v38 = vadd.f32 %v1567_v3, %v3066_v29  ;;  %v1571_v57 = vadd.f32 %v1570_v51, %v1410_v16 }
 0x279   : > { %1670 = vst [vmem:[%s2908_s21 + $0x20] sm:$0xff] %v1637_v12  ;;  %v1639_v60 = vadd.f32 %v1569_v48, %v3067_v26 }
 0x27a   : > { %1671 = vst.msk [vmem:[%s2908_s21 + $0x28] sm:$0xff] %vm1666_vm0, %v1638_v38  ;;  %v1640_v8 = vadd.f32 %v1571_v57, %v3068_v59  ;;  %v1445_v57 = vpop.permute.xlu0 %1444 }
 0x27b   : > { %1672 = vst [vmem:[%s2908_s21 + $0x30] sm:$0xff] %v1639_v60 }
 0x27c   : > { %1673 = vst.msk [vmem:[%s2908_s21 + $0x38] sm:$0xff] %vm1666_vm0, %v1640_v8  ;;  %v1574_v49 = vpop.f32.mrb[24].mxu0 }
 0x27d   : > { %v1575_v53 = vadd.f32 %v1574_v49, %v1415_v1  ;;  %v1576_v40 = vpop.f32.mrb[25].mxu0 }
 0x27e   : > { %v1577_v4 = vadd.f32 %v1576_v40, %v1415_v1  ;;  %v1578_v2 = vpop.f32.mrb[26].mxu0 }
 0x27f   : > { %v1641_v42 = vadd.f32 %v1575_v53, %v2483_v0  ;;  %v1579_v44 = vadd.f32 %v1578_v2, %v1420_v10  ;;  %v1580_v52 = vpop.f32.mrb[27].mxu0 }
 0x280   : > { %v1642_v6 = vadd.f32 %v1577_v4, %v2490_v62  ;;  %v1581_v54 = vadd.f32 %v1580_v52, %v1420_v10  ;;  %v1430_v62 = vpop.permute.xlu1 %1429  ;;  %v1455_v4 = vpop.permute.xlu0 %1454 }
 0x281   : > { %1674 = vst [vmem:[%s2908_s21 + $0x40] sm:$0xff] %v1641_v42  ;;  %v1643_v37 = vadd.f32 %v1579_v44, %v2498_v11 }
 0x282   : > { %1675 = vst.msk [vmem:[%s2908_s21 + $0x48] sm:$0xff] %vm1666_vm0, %v1642_v6  ;;  %v1644_v17 = vadd.f32 %v1581_v54, %v3069_v20 }
 0x283   : > { %1676 = vst [vmem:[%s2908_s21 + $0x50] sm:$0xff] %v1643_v37 }
 0x284   : > { %1677 = vst.msk [vmem:[%s2908_s21 + $0x58] sm:$0xff] %vm1666_vm0, %v1644_v17  ;;  %v1584_v0 = vpop.f32.mrb[28].mxu0 }
 0x285   : > { %v1585_v50 = vadd.f32 %v1584_v0, %v1425_v14  ;;  %v1586_v27 = vpop.f32.mrb[29].mxu0 }
 0x286   : > { %v1587_v32 = vadd.f32 %v1586_v27, %v1425_v14  ;;  %v1588_v56 = vpop.f32.mrb[30].mxu0  ;;  %v1465_v14 = vpop.permute.xlu0 %1464 }
 0x287   : > { %v1645_v11 = vadd.f32 %v1585_v50, %v2526_v13  ;;  %v1589_v43 = vadd.f32 %v1588_v56, %v1430_v62  ;;  %v1590_v28 = vpop.f32.mrb[31].mxu0 }
 0x288   : > { %v1646_v41 = vadd.f32 %v1587_v32, %v2534_v9  ;;  %v1591_v24 = vadd.f32 %v1590_v28, %v1430_v62  ;;  %v1440_v9 = vpop.permute.xlu1 %1439 }
 0x289   : > { %1678 = vst [vmem:[%s2908_s21 + $0x60] sm:$0xff] %v1645_v11  ;;  %v1647_v22 = vadd.f32 %v1589_v43, %v2542_v21 }
 0x28a   : > { %1679 = vst.msk [vmem:[%s2908_s21 + $0x68] sm:$0xff] %vm1666_vm0, %v1646_v41  ;;  %v1648_v5 = vadd.f32 %v1591_v24, %v2565_v58 }
 0x28b   : > { %1680 = vst [vmem:[%s2908_s21 + $0x70] sm:$0xff] %v1647_v22 }
 0x28c   : > { %1681 = vst.msk [vmem:[%s2908_s21 + $0x78] sm:$0xff] %vm1666_vm0, %v1648_v5  ;;  %v1594_v13 = vpop.f32.mrb[32].mxu0 }
 0x28d   : > { %v1595_v16 = vadd.f32 %v1594_v13, %v1435_v19  ;;  %v1596_v3 = vpop.f32.mrb[33].mxu0 }
 0x28e   : > { %v1597_v63 = vadd.f32 %v1596_v3, %v1435_v19  ;;  %v1598_v46 = vpop.f32.mrb[34].mxu0 }
 0x28f   : > { %v1649_v21 = vadd.f32 %v1595_v16, %v2419_v31  ;;  %v1599_v12 = vadd.f32 %v1598_v46, %v1440_v9  ;;  %v1600_v48 = vpop.f32.mrb[35].mxu0 }
 0x290   : > { %v1650_v51 = vadd.f32 %v1597_v63, %v3050_v55  ;;  %v1601_v58 = vadd.f32 %v1600_v48, %v1440_v9  ;;  %v1450_v55 = vpop.permute.xlu1 %1449 }
 0x291   : > { %1682 = vst [vmem:[%s2908_s21 + $0x80] sm:$0xff] %v1649_v21  ;;  %v1651_v29 = vadd.f32 %v1599_v12, %v3048_v18 }
 0x292   : > { %1683 = vst.msk [vmem:[%s2908_s21 + $0x88] sm:$0xff] %vm1666_vm0, %v1650_v51  ;;  %v1652_v38 = vadd.f32 %v1601_v58, %v3051_v25 }
 0x293   : > { %1684 = vst [vmem:[%s2908_s21 + $0x90] sm:$0xff] %v1651_v29 }
 0x294   : > { %1685 = vst.msk [vmem:[%s2908_s21 + $0x98] sm:$0xff] %vm1666_vm0, %v1652_v38  ;;  %v1604_v31 = vpop.f32.mrb[36].mxu0 }
 0x295   : > { %v1605_v26 = vadd.f32 %v1604_v31, %v1445_v57  ;;  %v1606_v60 = vpop.f32.mrb[37].mxu0 }
 0x296   : > { %v1607_v59 = vadd.f32 %v1606_v60, %v1445_v57  ;;  %v1608_v8 = vpop.f32.mrb[38].mxu0 }
 0x297   : > { %v1653_v18 = vadd.f32 %v1605_v26, %v3052_v34  ;;  %v1609_v1 = vadd.f32 %v1608_v8, %v1450_v55  ;;  %v1610_v49 = vpop.f32.mrb[39].mxu0 }
 0x298   : > { %v1654_v53 = vadd.f32 %v1607_v59, %v3055_v35  ;;  %v1611_v25 = vadd.f32 %v1610_v49, %v1450_v55  ;;  %v1460_v35 = vpop.permute.xlu1 %1459 }
 0x299   : > { %1686 = vst [vmem:[%s2908_s21 + $0xa0] sm:$0xff] %v1653_v18  ;;  %v1655_v40 = vadd.f32 %v1609_v1, %v3053_v36 }
 0x29a   : > { %1687 = vst.msk [vmem:[%s2908_s21 + $0xa8] sm:$0xff] %vm1666_vm0, %v1654_v53  ;;  %v1656_v10 = vadd.f32 %v1611_v25, %v3056_v61 }
 0x29b   : > { %1688 = vst [vmem:[%s2908_s21 + $0xb0] sm:$0xff] %v1655_v40 }
 0x29c   : > { %1689 = vst.msk [vmem:[%s2908_s21 + $0xb8] sm:$0xff] %vm1666_vm0, %v1656_v10  ;;  %v1614_v34 = vpop.f32.mrb[40].mxu0 }
 0x29d   : > { %v1615_v2 = vadd.f32 %v1614_v34, %v1455_v4  ;;  %v1616_v42 = vpop.f32.mrb[41].mxu0 }
 0x29e   : > { %v1617_v44 = vadd.f32 %v1616_v42, %v1455_v4  ;;  %v1618_v52 = vpop.f32.mrb[42].mxu0 }
 0x29f   : > { %v1657_v36 = vadd.f32 %v1615_v2, %v3054_v30  ;;  %v1619_v6 = vadd.f32 %v1618_v52, %v1460_v35  ;;  %v1620_v54 = vpop.f32.mrb[43].mxu0 }
 0x2a0   : > { %v1658_v37 = vadd.f32 %v1617_v44, %v2845_v39  ;;  %v1621_v61 = vadd.f32 %v1620_v54, %v1460_v35  ;;  %v1470_v39 = vpop.permute.xlu1 %1469 }
 0x2a1   : > { %1690 = vst [vmem:[%s2908_s21 + $0xc0] sm:$0xff] %v1657_v36  ;;  %v1659_v20 = vadd.f32 %v1619_v6, %v2828_v47 }
 0x2a2   : > { %1691 = vst.msk [vmem:[%s2908_s21 + $0xc8] sm:$0xff] %vm1666_vm0, %v1658_v37  ;;  %v1660_v17 = vadd.f32 %v1621_v61, %v2848_v23 }
 0x2a3   : > { %1692 = vst [vmem:[%s2908_s21 + $0xd0] sm:$0xff] %v1659_v20 }
 0x2a4   : > { %1693 = vst.msk [vmem:[%s2908_s21 + $0xd8] sm:$0xff] %vm1666_vm0, %v1660_v17  ;;  %v1624_v30 = vpop.f32.mrb[44].mxu0 }
 0x2a5   : > { %v1625_v0 = vadd.f32 %v1624_v30, %v1465_v14  ;;  %v1626_v50 = vpop.f32.mrb[45].mxu0 }
 0x2a6   : > { %v1627_v27 = vadd.f32 %v1626_v50, %v1465_v14  ;;  %v1628_v62 = vpop.f32.mrb[46].mxu0 }
 0x2a7   : > { %v1661_v47 = vadd.f32 %v1625_v0, %v2855_v33  ;;  %v1629_v32 = vadd.f32 %v1628_v62, %v1470_v39  ;;  %v1630_v56 = vpop.f32.mrb[47].mxu0 }
 0x2a8   : > { %v1662_v11 = vadd.f32 %v1627_v27, %v2863_v45  ;;  %v1631_v23 = vadd.f32 %v1630_v56, %v1470_v39 }
 0x2a9   : > { %1694 = vst [vmem:[%s2908_s21 + $0xe0] sm:$0xff] %v1661_v47  ;;  %v1663_v43 = vadd.f32 %v1629_v32, %v2858_v15 }
 0x2aa   : > { %1695 = vst.msk [vmem:[%s2908_s21 + $0xe8] sm:$0xff] %vm1666_vm0, %v1662_v11  ;;  %v1664_v28 = vadd.f32 %v1631_v23, %v2866_v7 }
 0x2ab   : > { %1696 = vst [vmem:[%s2908_s21 + $0xf0] sm:$0xff] %v1663_v43 }
 0x2ac   : > { %1697 = vst.msk [vmem:[%s2908_s21 + $0xf8] sm:$0xff] %vm1666_vm0, %v1664_v28 }
 0x2ad PF: > { %s18_s29 = sadd.s32 1, %s1996_s29   ;;  %s3070_s27 = smov %s1992_s28 }
 0x2ae   : > { %p15_p5 = scmp.ge.s32.totalorder %s18_s29, 4   ;;  %s3071_s28 = smov %s3073_s30 }
 0x2b0   :  { %17 = sbr.rel (!%p15_p5) target bundleno = 2 (0x2), region = 85 }

</bundles_post_ra>
